<compile_context>
chip_gen: v5e
topology: v5e:2x2
jax: 0.10.0
libtpu: 0.0.40
codegen_flags: <defaults>
</compile_context>

<pallas_src>
import jax
import jax.numpy as jnp
import numpy as np
from jax import lax
from jax.experimental import pallas as pl
from jax.experimental.pallas import tpu as pltpu


def _round_up(x, m):
    return (x + m - 1) // m * m


def _make_irnn_kernel(t_blk):
    """One grid step processes t_blk timesteps for the whole batch."""

    def kernel(x_ref, wih_ref, whh_ref, b_ref, h0_ref, out_ref, h_scr):
        tb = pl.program_id(0)

        # Initialize the carried hidden state from h0 on the first time block only.
        @pl.when(tb == 0)
        def _():
            h_scr[...] = h0_ref[...]

        def step(i, h):
            # Input projection issued per step inside the unrolled loop: it does not
            # depend on h, so its MXU pushes overlap the latency-bound h @ W_hh chain.
            x_t = x_ref[i]                                            # (B, I) natural dims
            z_t = (jnp.dot(x_t.astype(wih_ref.dtype), wih_ref[...],
                           preferred_element_type=jnp.float32)
                   + b_ref[...])                                      # fp32 (B, H_pad)
            # Recurrent matmul; W_hh^T is fed from VMEM (no register hoist / spills).
            h_new = jnp.maximum(
                z_t + jnp.dot(h.astype(whh_ref.dtype), whh_ref[...],
                              preferred_element_type=jnp.float32),
                0.0)
            out_ref[i] = h_new.astype(out_ref.dtype)
            return h_new

        h_scr[...] = lax.fori_loop(0, t_blk, step, h_scr[...], unroll=True)

    return kernel


def irnn_forward(x, w_ih, w_hh, b_ih, b_hh, h0, *, t_blk_max=32, mxu_dtype=None):
    """x: (T, B, I), w_ih: (H, I), w_hh: (H, H), b_ih/b_hh: (H,), h0: (1, B, H).

    Returns (output (T, B, H), hidden (1, B, H)) matching _VF.rnn_relu.
    mxu_dtype: optional matmul-operand dtype (e.g. jnp.bfloat16); the hidden-state
    carry, bias add and ReLU always stay float32.
    """
    T, B, I = x.shape
    H = w_ih.shape[0]
    out_dtype = x.dtype
    mxu_dtype = jnp.dtype(mxu_dtype) if mxu_dtype is not None else jnp.dtype(x.dtype)

    H_pad = _round_up(H, 128)          # lane-dense outputs / MXU N dimension

    # Balanced time blocking: nt = cdiv(T, t_blk_max) blocks of t_blk <= t_blk_max steps.
    # Trailing padded steps (x = 0) compute discarded rows only.
    nt = pl.cdiv(T, t_blk_max)
    t_blk = pl.cdiv(T, nt)
    T_pad = nt * t_blk

    # Stream x with natural (B, I) trailing dims; only the time axis is zero-padded.
    x_s = x.astype(mxu_dtype)
    if T_pad > T:
        x_s = jnp.pad(x_s, ((0, T_pad - T), (0, 0), (0, 0)))

    # Weights pre-transposed, H lane-padded, cast to the MXU operand dtype.
    wih_t = jnp.zeros((I, H_pad), mxu_dtype).at[:, :H].set(jnp.asarray(w_ih, mxu_dtype).T)
    whh_t = jnp.zeros((H_pad, H_pad), mxu_dtype).at[:H, :H].set(jnp.asarray(w_hh, mxu_dtype).T)
    # Pre-summed bias and h0 stay fp32 (elementwise path / carry precision).
    bias = jnp.zeros((1, H_pad), jnp.float32).at[0, :H].set(
        jnp.asarray(b_ih, jnp.float32) + jnp.asarray(b_hh, jnp.float32))
    h0_p = jnp.zeros((B, H_pad), jnp.float32).at[:, :H].set(h0[0].astype(jnp.float32))

    # --- VMEM budget: exact buffer counts (x/out double-buffered, weights 1 or 2). ---
    def _vmem_bytes(single_buffer):
        wbuf = 1 if single_buffer else 2
        b_r = _round_up(B, 8)
        i_r = _round_up(I, 128)
        itm = jnp.dtype(mxu_dtype).itemsize
        x_b = 2 * t_blk * b_r * i_r * itm
        out_b = 2 * t_blk * b_r * H_pad * jnp.dtype(out_dtype).itemsize
        w_b = wbuf * (_round_up(I, 8) * H_pad + H_pad * H_pad) * itm
        misc_b = wbuf * (8 * H_pad + b_r * H_pad) * 4
        scr_b = b_r * H_pad * 4
        return x_b + out_b + w_b + misc_b + scr_b

    try:
        vmem_cap = int(pltpu.get_tpu_info().vmem_capacity_bytes)
    except Exception:
        vmem_cap = 64 << 20                      # safe on every generation
    vmem_cap = int(vmem_cap * 0.85)              # headroom for Mosaic internal scratch

    def build_call(single_buffer):
        inv = {"pipeline_mode": pl.Buffered(1)} if single_buffer else {}
        vmem_limit = int(min(vmem_cap,
                             max(_vmem_bytes(single_buffer) + (2 << 20), 4 << 20)))
        return pl.pallas_call(
            _make_irnn_kernel(t_blk),
            out_shape=jax.ShapeDtypeStruct((T_pad, B, H_pad), out_dtype),
            grid_spec=pltpu.PrefetchScalarGridSpec(
                num_scalar_prefetch=0,
                grid=(nt,),
                in_specs=[
                    pl.BlockSpec((t_blk, B, I), lambda t: (t, 0, 0)),        # x (streamed)
                    pl.BlockSpec((I, H_pad), lambda t: (0, 0), **inv),       # W_ih^T
                    pl.BlockSpec((H_pad, H_pad), lambda t: (0, 0), **inv),   # W_hh^T
                    pl.BlockSpec((1, H_pad), lambda t: (0, 0), **inv),       # b_ih + b_hh
                    pl.BlockSpec((B, H_pad), lambda t: (0, 0), **inv),       # h0
                ],
                out_specs=pl.BlockSpec((t_blk, B, H_pad), lambda t: (t, 0, 0)),
                scratch_shapes=[pltpu.VMEM((B, H_pad), jnp.float32)],        # carried h_t
            ),
            compiler_params=pltpu.CompilerParams(
                dimension_semantics=("arbitrary",),    # time is sequential (carry!)
                vmem_limit_bytes=vmem_limit),
        )

    args = (x_s, wih_t, whh_t, bias, h0_p)
    try:
        out3 = build_call(True)(*args)
        jax.block_until_ready(out3)
    except Exception:
        # Fallback if pl.Buffered(1) single-buffering is unsupported by this jax build.
        out3 = build_call(False)(*args)

    out = out3[:T, :, :H]
    hidden = out[-1:]      # h_T == output of the real last timestep (ReLU already applied)
    return out, hidden


def irnn_reference(x, w_ih, w_hh, b_ih, b_hh, h0):
    """Pure-JAX reference matching _VF.rnn_relu semantics."""
    def step(h, x_t):
        h_new = jnp.maximum(x_t @ w_ih.T + b_ih + h @ w_hh.T + b_hh, 0.0)
        return h_new, h_new
    hT, out = lax.scan(step, h0[0], x)
    return out, hT[None]


if __name__ == "__main__":
    # Small shapes consistent with the module: seq=8, batch=4, input_size=16, hidden=32.
    T, B, I, H = 8, 4, 16, 32
    dtype = jnp.float32

    key = jax.random.PRNGKey(0)
    k_x, k_wih, k_bih, k_x2 = jax.random.split(key, 4)

    x = jax.random.normal(k_x, (T, B, I), dtype=dtype)

    # IRNN deterministic parameter construction (matches IRNNBase.__init__).
    w_ih = 0.001 * jax.random.normal(k_wih, (H, I), dtype=dtype)   # init_params: N(0, 0.001)
    w_hh = jnp.eye(H, H, dtype=dtype) * 0.01                       # identity * 0.01
    b_ih = 0.001 * jax.random.normal(k_bih, (H,), dtype=dtype)     # init_params: N(0, 0.001)
    b_hh = jnp.zeros((H,), dtype=dtype)                            # zeros

    # hx defaults to zeros (num_layers * num_directions, B, H) = (1, B, H).
    h0 = jnp.zeros((1, B, H), dtype=dtype)

    # fp32 path: exact module numerics.
    out, hidden = irnn_forward(x, w_ih, w_hh, b_ih, b_hh, h0)
    jax.block_until_ready((out, hidden))
    out_ref, hidden_ref = irnn_reference(x, w_ih, w_hh, b_ih, b_hh, h0)
    np.testing.assert_allclose(np.asarray(out), np.asarray(out_ref), atol=1e-5, rtol=1e-5)
    np.testing.assert_allclose(np.asarray(hidden), np.asarray(hidden_ref), atol=1e-5, rtol=1e-5)

    # Non-composite T with multiple time blocks: exercises time padding + h carry.
    T2 = 7
    x2 = jax.random.normal(k_x2, (T2, B, I), dtype=dtype)
    out2, hidden2 = irnn_forward(x2, w_ih, w_hh, b_ih, b_hh, h0, t_blk_max=4)
    jax.block_until_ready((out2, hidden2))
    out2_ref, hidden2_ref = irnn_reference(x2, w_ih, w_hh, b_ih, b_hh, h0)
    np.testing.assert_allclose(np.asarray(out2), np.asarray(out2_ref), atol=1e-5, rtol=1e-5)
    np.testing.assert_allclose(np.asarray(hidden2), np.asarray(hidden2_ref), atol=1e-5, rtol=1e-5)

    # bf16 MXU-operand path (looser tolerance: operands are quantized, carry stays fp32).
    out_bf, hid_bf = irnn_forward(x, w_ih, w_hh, b_ih, b_hh, h0, mxu_dtype=jnp.bfloat16)
    jax.block_until_ready((out_bf, hid_bf))
    np.testing.assert_allclose(np.asarray(out_bf), np.asarray(out_ref), atol=1e-3, rtol=1e-1)

    print("KERNEL_OK")
</pallas_src>

<mosaic_0001>
module attributes {stable_mosaic.version = 11 : i64} {
  func.func @kernel(%arg0: i32, %arg1: memref<8x4x16xf32, #tpu.memory_space<vmem>>, %arg2: memref<16x128xf32, #tpu.memory_space<vmem>>, %arg3: memref<128x128xf32, #tpu.memory_space<vmem>>, %arg4: memref<1x128xf32, #tpu.memory_space<vmem>>, %arg5: memref<4x128xf32, #tpu.memory_space<vmem>>, %arg6: memref<8x4x128xf32, #tpu.memory_space<vmem>>, %arg7: memref<4x128xf32, #tpu.memory_space<vmem>>) attributes {dimension_semantics = [#tpu.dimension_semantics<arbitrary>], iteration_bounds = array<i64: 1>, scalar_prefetch = 0 : i64, scratch_operands = 1 : i64, tpu.core_type = #tpu.core_type<tc>, window_params = [{transform_indices = @transform_0, window_bounds = array<i64: 8, 4, 16>}, {pipeline_mode = #tpu.pipeline_mode<synchronous>, transform_indices = @transform_1, window_bounds = array<i64: 16, 128>}, {pipeline_mode = #tpu.pipeline_mode<synchronous>, transform_indices = @transform_2, window_bounds = array<i64: 128, 128>}, {pipeline_mode = #tpu.pipeline_mode<synchronous>, transform_indices = @transform_3, window_bounds = array<i64: 1, 128>}, {pipeline_mode = #tpu.pipeline_mode<synchronous>, transform_indices = @transform_4, window_bounds = array<i64: 4, 128>}, {transform_indices = @transform_5, window_bounds = array<i64: 8, 4, 128>}]} {
    %c0_i32 = arith.constant 0 : i32
    %0 = arith.cmpi eq, %arg0, %c0_i32 : i32
    %1 = arith.extui %0 : i1 to i32
    %c0_i32_0 = arith.constant 0 : i32
    %2 = arith.cmpi ne, %1, %c0_i32_0 : i32
    scf.if %2 {
      %c0_108 = arith.constant 0 : index
      %c0_109 = arith.constant 0 : index
      %141 = vector.load %arg5[%c0_108, %c0_109] : memref<4x128xf32, #tpu.memory_space<vmem>>, vector<4x128xf32>
      %c0_110 = arith.constant 0 : index
      %c0_111 = arith.constant 0 : index
      %142 = vector.load %arg7[%c0_110, %c0_111] : memref<4x128xf32, #tpu.memory_space<vmem>>, vector<4x128xf32>
      tpu.vector_store %arg7[%c0_110, %c0_111], %141 {strides = array<i32>} : memref<4x128xf32, #tpu.memory_space<vmem>>, vector<4x128xf32>,
    } else {
    }
    %c0 = arith.constant 0 : index
    %c0_1 = arith.constant 0 : index
    %3 = vector.load %arg7[%c0, %c0_1] : memref<4x128xf32, #tpu.memory_space<vmem>>, vector<4x128xf32>
    %c0_i32_2 = arith.constant 0 : i32
    %4 = arith.index_cast %c0_i32_2 : i32 to index
    %c0_3 = arith.constant 0 : index
    %c0_4 = arith.constant 0 : index
    %5 = vector.load %arg1[%4, %c0_3, %c0_4] : memref<8x4x16xf32, #tpu.memory_space<vmem>>, vector<1x4x16xf32>
    %6 = vector.shape_cast %5 : vector<1x4x16xf32> to vector<4x16xf32>
    %c0_5 = arith.constant 0 : index
    %c0_6 = arith.constant 0 : index
    %7 = vector.load %arg2[%c0_5, %c0_6] : memref<16x128xf32, #tpu.memory_space<vmem>>, vector<16x128xf32>
    %cst = arith.constant dense<0.000000e+00> : vector<4x128xf32>
    %8 = tpu.matmul %6, %7, %cst {dimension_numbers = #tpu.dot_dimension_numbers<[1], [0], [0], [1], [0, 0, 1, 1], [], []>} : vector<4x16xf32>, vector<16x128xf32>, vector<4x128xf32> -> vector<4x128xf32>
    %c0_7 = arith.constant 0 : index
    %c0_8 = arith.constant 0 : index
    %9 = vector.load %arg4[%c0_7, %c0_8] : memref<1x128xf32, #tpu.memory_space<vmem>>, vector<1x128xf32>
    %10 = vector.broadcast %9 : vector<1x128xf32> to vector<4x128xf32>
    %11 = arith.addf %8, %10 : vector<4x128xf32>
    %c0_9 = arith.constant 0 : index
    %c0_10 = arith.constant 0 : index
    %12 = vector.load %arg3[%c0_9, %c0_10] : memref<128x128xf32, #tpu.memory_space<vmem>>, vector<128x128xf32>
    %cst_11 = arith.constant dense<0.000000e+00> : vector<4x128xf32>
    %13 = tpu.matmul %3, %12, %cst_11 {dimension_numbers = #tpu.dot_dimension_numbers<[1], [0], [0], [1], [0, 0, 1, 1], [], []>} : vector<4x128xf32>, vector<128x128xf32>, vector<4x128xf32> -> vector<4x128xf32>
    %14 = arith.addf %11, %13 : vector<4x128xf32>
    %cst_12 = arith.constant 0.000000e+00 : f32
    %15 = vector.broadcast %cst_12 : f32 to vector<4x128xf32>
    %16 = arith.maximumf %14, %15 : vector<4x128xf32>
    %17 = arith.index_cast %c0_i32_2 : i32 to index
    %c0_13 = arith.constant 0 : index
    %c0_14 = arith.constant 0 : index
    %18 = vector.load %arg6[%17, %c0_13, %c0_14] : memref<8x4x128xf32, #tpu.memory_space<vmem>>, vector<1x4x128xf32>
    %19 = vector.shape_cast %18 : vector<1x4x128xf32> to vector<4x128xf32>
    %20 = vector.shape_cast %16 : vector<4x128xf32> to vector<1x4x128xf32>
    tpu.vector_store %arg6[%17, %c0_13, %c0_14], %20 {strides = array<i32>} : memref<8x4x128xf32, #tpu.memory_space<vmem>>, vector<1x4x128xf32>,
    %c1_i32 = arith.constant 1 : i32
    %21 = arith.index_cast %c1_i32 : i32 to index
    %c0_15 = arith.constant 0 : index
    %c0_16 = arith.constant 0 : index
    %22 = vector.load %arg1[%21, %c0_15, %c0_16] : memref<8x4x16xf32, #tpu.memory_space<vmem>>, vector<1x4x16xf32>
    %23 = vector.shape_cast %22 : vector<1x4x16xf32> to vector<4x16xf32>
    %c0_17 = arith.constant 0 : index
    %c0_18 = arith.constant 0 : index
    %24 = vector.load %arg2[%c0_17, %c0_18] : memref<16x128xf32, #tpu.memory_space<vmem>>, vector<16x128xf32>
    %cst_19 = arith.constant dense<0.000000e+00> : vector<4x128xf32>
    %25 = tpu.matmul %23, %24, %cst_19 {dimension_numbers = #tpu.dot_dimension_numbers<[1], [0], [0], [1], [0, 0, 1, 1], [], []>} : vector<4x16xf32>, vector<16x128xf32>, vector<4x128xf32> -> vector<4x128xf32>
    %c0_20 = arith.constant 0 : index
    %c0_21 = arith.constant 0 : index
    %26 = vector.load %arg4[%c0_20, %c0_21] : memref<1x128xf32, #tpu.memory_space<vmem>>, vector<1x128xf32>
    %27 = vector.broadcast %26 : vector<1x128xf32> to vector<4x128xf32>
    %28 = arith.addf %25, %27 : vector<4x128xf32>
    %c0_22 = arith.constant 0 : index
    %c0_23 = arith.constant 0 : index
    %29 = vector.load %arg3[%c0_22, %c0_23] : memref<128x128xf32, #tpu.memory_space<vmem>>, vector<128x128xf32>
    %cst_24 = arith.constant dense<0.000000e+00> : vector<4x128xf32>
    %30 = tpu.matmul %16, %29, %cst_24 {dimension_numbers = #tpu.dot_dimension_numbers<[1], [0], [0], [1], [0, 0, 1, 1], [], []>} : vector<4x128xf32>, vector<128x128xf32>, vector<4x128xf32> -> vector<4x128xf32>
    %31 = arith.addf %28, %30 : vector<4x128xf32>
    %cst_25 = arith.constant 0.000000e+00 : f32
    %32 = vector.broadcast %cst_25 : f32 to vector<4x128xf32>
    %33 = arith.maximumf %31, %32 : vector<4x128xf32>
    %34 = arith.index_cast %c1_i32 : i32 to index
    %c0_26 = arith.constant 0 : index
    %c0_27 = arith.constant 0 : index
    %35 = vector.load %arg6[%34, %c0_26, %c0_27] : memref<8x4x128xf32, #tpu.memory_space<vmem>>, vector<1x4x128xf32>
    %36 = vector.shape_cast %35 : vector<1x4x128xf32> to vector<4x128xf32>
    %37 = vector.shape_cast %33 : vector<4x128xf32> to vector<1x4x128xf32>
    tpu.vector_store %arg6[%34, %c0_26, %c0_27], %37 {strides = array<i32>} : memref<8x4x128xf32, #tpu.memory_space<vmem>>, vector<1x4x128xf32>,
    %c2_i32 = arith.constant 2 : i32
    %38 = arith.index_cast %c2_i32 : i32 to index
    %c0_28 = arith.constant 0 : index
    %c0_29 = arith.constant 0 : index
    %39 = vector.load %arg1[%38, %c0_28, %c0_29] : memref<8x4x16xf32, #tpu.memory_space<vmem>>, vector<1x4x16xf32>
    %40 = vector.shape_cast %39 : vector<1x4x16xf32> to vector<4x16xf32>
    %c0_30 = arith.constant 0 : index
    %c0_31 = arith.constant 0 : index
    %41 = vector.load %arg2[%c0_30, %c0_31] : memref<16x128xf32, #tpu.memory_space<vmem>>, vector<16x128xf32>
    %cst_32 = arith.constant dense<0.000000e+00> : vector<4x128xf32>
    %42 = tpu.matmul %40, %41, %cst_32 {dimension_numbers = #tpu.dot_dimension_numbers<[1], [0], [0], [1], [0, 0, 1, 1], [], []>} : vector<4x16xf32>, vector<16x128xf32>, vector<4x128xf32> -> vector<4x128xf32>
    %c0_33 = arith.constant 0 : index
    %c0_34 = arith.constant 0 : index
    %43 = vector.load %arg4[%c0_33, %c0_34] : memref<1x128xf32, #tpu.memory_space<vmem>>, vector<1x128xf32>
    %44 = vector.broadcast %43 : vector<1x128xf32> to vector<4x128xf32>
    %45 = arith.addf %42, %44 : vector<4x128xf32>
    %c0_35 = arith.constant 0 : index
    %c0_36 = arith.constant 0 : index
    %46 = vector.load %arg3[%c0_35, %c0_36] : memref<128x128xf32, #tpu.memory_space<vmem>>, vector<128x128xf32>
    %cst_37 = arith.constant dense<0.000000e+00> : vector<4x128xf32>
    %47 = tpu.matmul %33, %46, %cst_37 {dimension_numbers = #tpu.dot_dimension_numbers<[1], [0], [0], [1], [0, 0, 1, 1], [], []>} : vector<4x128xf32>, vector<128x128xf32>, vector<4x128xf32> -> vector<4x128xf32>
    %48 = arith.addf %45, %47 : vector<4x128xf32>
    %cst_38 = arith.constant 0.000000e+00 : f32
    %49 = vector.broadcast %cst_38 : f32 to vector<4x128xf32>
    %50 = arith.maximumf %48, %49 : vector<4x128xf32>
    %51 = arith.index_cast %c2_i32 : i32 to index
    %c0_39 = arith.constant 0 : index
    %c0_40 = arith.constant 0 : index
    %52 = vector.load %arg6[%51, %c0_39, %c0_40] : memref<8x4x128xf32, #tpu.memory_space<vmem>>, vector<1x4x128xf32>
    %53 = vector.shape_cast %52 : vector<1x4x128xf32> to vector<4x128xf32>
    %54 = vector.shape_cast %50 : vector<4x128xf32> to vector<1x4x128xf32>
    tpu.vector_store %arg6[%51, %c0_39, %c0_40], %54 {strides = array<i32>} : memref<8x4x128xf32, #tpu.memory_space<vmem>>, vector<1x4x128xf32>,
    %c3_i32 = arith.constant 3 : i32
    %55 = arith.index_cast %c3_i32 : i32 to index
    %c0_41 = arith.constant 0 : index
    %c0_42 = arith.constant 0 : index
    %56 = vector.load %arg1[%55, %c0_41, %c0_42] : memref<8x4x16xf32, #tpu.memory_space<vmem>>, vector<1x4x16xf32>
    %57 = vector.shape_cast %56 : vector<1x4x16xf32> to vector<4x16xf32>
    %c0_43 = arith.constant 0 : index
    %c0_44 = arith.constant 0 : index
    %58 = vector.load %arg2[%c0_43, %c0_44] : memref<16x128xf32, #tpu.memory_space<vmem>>, vector<16x128xf32>
    %cst_45 = arith.constant dense<0.000000e+00> : vector<4x128xf32>
    %59 = tpu.matmul %57, %58, %cst_45 {dimension_numbers = #tpu.dot_dimension_numbers<[1], [0], [0], [1], [0, 0, 1, 1], [], []>} : vector<4x16xf32>, vector<16x128xf32>, vector<4x128xf32> -> vector<4x128xf32>
    %c0_46 = arith.constant 0 : index
    %c0_47 = arith.constant 0 : index
    %60 = vector.load %arg4[%c0_46, %c0_47] : memref<1x128xf32, #tpu.memory_space<vmem>>, vector<1x128xf32>
    %61 = vector.broadcast %60 : vector<1x128xf32> to vector<4x128xf32>
    %62 = arith.addf %59, %61 : vector<4x128xf32>
    %c0_48 = arith.constant 0 : index
    %c0_49 = arith.constant 0 : index
    %63 = vector.load %arg3[%c0_48, %c0_49] : memref<128x128xf32, #tpu.memory_space<vmem>>, vector<128x128xf32>
    %cst_50 = arith.constant dense<0.000000e+00> : vector<4x128xf32>
    %64 = tpu.matmul %50, %63, %cst_50 {dimension_numbers = #tpu.dot_dimension_numbers<[1], [0], [0], [1], [0, 0, 1, 1], [], []>} : vector<4x128xf32>, vector<128x128xf32>, vector<4x128xf32> -> vector<4x128xf32>
    %65 = arith.addf %62, %64 : vector<4x128xf32>
    %cst_51 = arith.constant 0.000000e+00 : f32
    %66 = vector.broadcast %cst_51 : f32 to vector<4x128xf32>
    %67 = arith.maximumf %65, %66 : vector<4x128xf32>
    %68 = arith.index_cast %c3_i32 : i32 to index
    %c0_52 = arith.constant 0 : index
    %c0_53 = arith.constant 0 : index
    %69 = vector.load %arg6[%68, %c0_52, %c0_53] : memref<8x4x128xf32, #tpu.memory_space<vmem>>, vector<1x4x128xf32>
    %70 = vector.shape_cast %69 : vector<1x4x128xf32> to vector<4x128xf32>
    %71 = vector.shape_cast %67 : vector<4x128xf32> to vector<1x4x128xf32>
    tpu.vector_store %arg6[%68, %c0_52, %c0_53], %71 {strides = array<i32>} : memref<8x4x128xf32, #tpu.memory_space<vmem>>, vector<1x4x128xf32>,
    %c4_i32 = arith.constant 4 : i32
    %72 = arith.index_cast %c4_i32 : i32 to index
    %c0_54 = arith.constant 0 : index
    %c0_55 = arith.constant 0 : index
    %73 = vector.load %arg1[%72, %c0_54, %c0_55] : memref<8x4x16xf32, #tpu.memory_space<vmem>>, vector<1x4x16xf32>
    %74 = vector.shape_cast %73 : vector<1x4x16xf32> to vector<4x16xf32>
    %c0_56 = arith.constant 0 : index
    %c0_57 = arith.constant 0 : index
    %75 = vector.load %arg2[%c0_56, %c0_57] : memref<16x128xf32, #tpu.memory_space<vmem>>, vector<16x128xf32>
    %cst_58 = arith.constant dense<0.000000e+00> : vector<4x128xf32>
    %76 = tpu.matmul %74, %75, %cst_58 {dimension_numbers = #tpu.dot_dimension_numbers<[1], [0], [0], [1], [0, 0, 1, 1], [], []>} : vector<4x16xf32>, vector<16x128xf32>, vector<4x128xf32> -> vector<4x128xf32>
    %c0_59 = arith.constant 0 : index
    %c0_60 = arith.constant 0 : index
    %77 = vector.load %arg4[%c0_59, %c0_60] : memref<1x128xf32, #tpu.memory_space<vmem>>, vector<1x128xf32>
    %78 = vector.broadcast %77 : vector<1x128xf32> to vector<4x128xf32>
    %79 = arith.addf %76, %78 : vector<4x128xf32>
    %c0_61 = arith.constant 0 : index
    %c0_62 = arith.constant 0 : index
    %80 = vector.load %arg3[%c0_61, %c0_62] : memref<128x128xf32, #tpu.memory_space<vmem>>, vector<128x128xf32>
    %cst_63 = arith.constant dense<0.000000e+00> : vector<4x128xf32>
    %81 = tpu.matmul %67, %80, %cst_63 {dimension_numbers = #tpu.dot_dimension_numbers<[1], [0], [0], [1], [0, 0, 1, 1], [], []>} : vector<4x128xf32>, vector<128x128xf32>, vector<4x128xf32> -> vector<4x128xf32>
    %82 = arith.addf %79, %81 : vector<4x128xf32>
    %cst_64 = arith.constant 0.000000e+00 : f32
    %83 = vector.broadcast %cst_64 : f32 to vector<4x128xf32>
    %84 = arith.maximumf %82, %83 : vector<4x128xf32>
    %85 = arith.index_cast %c4_i32 : i32 to index
    %c0_65 = arith.constant 0 : index
    %c0_66 = arith.constant 0 : index
    %86 = vector.load %arg6[%85, %c0_65, %c0_66] : memref<8x4x128xf32, #tpu.memory_space<vmem>>, vector<1x4x128xf32>
    %87 = vector.shape_cast %86 : vector<1x4x128xf32> to vector<4x128xf32>
    %88 = vector.shape_cast %84 : vector<4x128xf32> to vector<1x4x128xf32>
    tpu.vector_store %arg6[%85, %c0_65, %c0_66], %88 {strides = array<i32>} : memref<8x4x128xf32, #tpu.memory_space<vmem>>, vector<1x4x128xf32>,
    %c5_i32 = arith.constant 5 : i32
    %89 = arith.index_cast %c5_i32 : i32 to index
    %c0_67 = arith.constant 0 : index
    %c0_68 = arith.constant 0 : index
    %90 = vector.load %arg1[%89, %c0_67, %c0_68] : memref<8x4x16xf32, #tpu.memory_space<vmem>>, vector<1x4x16xf32>
    %91 = vector.shape_cast %90 : vector<1x4x16xf32> to vector<4x16xf32>
    %c0_69 = arith.constant 0 : index
    %c0_70 = arith.constant 0 : index
    %92 = vector.load %arg2[%c0_69, %c0_70] : memref<16x128xf32, #tpu.memory_space<vmem>>, vector<16x128xf32>
    %cst_71 = arith.constant dense<0.000000e+00> : vector<4x128xf32>
    %93 = tpu.matmul %91, %92, %cst_71 {dimension_numbers = #tpu.dot_dimension_numbers<[1], [0], [0], [1], [0, 0, 1, 1], [], []>} : vector<4x16xf32>, vector<16x128xf32>, vector<4x128xf32> -> vector<4x128xf32>
    %c0_72 = arith.constant 0 : index
    %c0_73 = arith.constant 0 : index
    %94 = vector.load %arg4[%c0_72, %c0_73] : memref<1x128xf32, #tpu.memory_space<vmem>>, vector<1x128xf32>
    %95 = vector.broadcast %94 : vector<1x128xf32> to vector<4x128xf32>
    %96 = arith.addf %93, %95 : vector<4x128xf32>
    %c0_74 = arith.constant 0 : index
    %c0_75 = arith.constant 0 : index
    %97 = vector.load %arg3[%c0_74, %c0_75] : memref<128x128xf32, #tpu.memory_space<vmem>>, vector<128x128xf32>
    %cst_76 = arith.constant dense<0.000000e+00> : vector<4x128xf32>
    %98 = tpu.matmul %84, %97, %cst_76 {dimension_numbers = #tpu.dot_dimension_numbers<[1], [0], [0], [1], [0, 0, 1, 1], [], []>} : vector<4x128xf32>, vector<128x128xf32>, vector<4x128xf32> -> vector<4x128xf32>
    %99 = arith.addf %96, %98 : vector<4x128xf32>
    %cst_77 = arith.constant 0.000000e+00 : f32
    %100 = vector.broadcast %cst_77 : f32 to vector<4x128xf32>
    %101 = arith.maximumf %99, %100 : vector<4x128xf32>
    %102 = arith.index_cast %c5_i32 : i32 to index
    %c0_78 = arith.constant 0 : index
    %c0_79 = arith.constant 0 : index
    %103 = vector.load %arg6[%102, %c0_78, %c0_79] : memref<8x4x128xf32, #tpu.memory_space<vmem>>, vector<1x4x128xf32>
    %104 = vector.shape_cast %103 : vector<1x4x128xf32> to vector<4x128xf32>
    %105 = vector.shape_cast %101 : vector<4x128xf32> to vector<1x4x128xf32>
    tpu.vector_store %arg6[%102, %c0_78, %c0_79], %105 {strides = array<i32>} : memref<8x4x128xf32, #tpu.memory_space<vmem>>, vector<1x4x128xf32>,
    %c6_i32 = arith.constant 6 : i32
    %106 = arith.index_cast %c6_i32 : i32 to index
    %c0_80 = arith.constant 0 : index
    %c0_81 = arith.constant 0 : index
    %107 = vector.load %arg1[%106, %c0_80, %c0_81] : memref<8x4x16xf32, #tpu.memory_space<vmem>>, vector<1x4x16xf32>
    %108 = vector.shape_cast %107 : vector<1x4x16xf32> to vector<4x16xf32>
    %c0_82 = arith.constant 0 : index
    %c0_83 = arith.constant 0 : index
    %109 = vector.load %arg2[%c0_82, %c0_83] : memref<16x128xf32, #tpu.memory_space<vmem>>, vector<16x128xf32>
    %cst_84 = arith.constant dense<0.000000e+00> : vector<4x128xf32>
    %110 = tpu.matmul %108, %109, %cst_84 {dimension_numbers = #tpu.dot_dimension_numbers<[1], [0], [0], [1], [0, 0, 1, 1], [], []>} : vector<4x16xf32>, vector<16x128xf32>, vector<4x128xf32> -> vector<4x128xf32>
    %c0_85 = arith.constant 0 : index
    %c0_86 = arith.constant 0 : index
    %111 = vector.load %arg4[%c0_85, %c0_86] : memref<1x128xf32, #tpu.memory_space<vmem>>, vector<1x128xf32>
    %112 = vector.broadcast %111 : vector<1x128xf32> to vector<4x128xf32>
    %113 = arith.addf %110, %112 : vector<4x128xf32>
    %c0_87 = arith.constant 0 : index
    %c0_88 = arith.constant 0 : index
    %114 = vector.load %arg3[%c0_87, %c0_88] : memref<128x128xf32, #tpu.memory_space<vmem>>, vector<128x128xf32>
    %cst_89 = arith.constant dense<0.000000e+00> : vector<4x128xf32>
    %115 = tpu.matmul %101, %114, %cst_89 {dimension_numbers = #tpu.dot_dimension_numbers<[1], [0], [0], [1], [0, 0, 1, 1], [], []>} : vector<4x128xf32>, vector<128x128xf32>, vector<4x128xf32> -> vector<4x128xf32>
    %116 = arith.addf %113, %115 : vector<4x128xf32>
    %cst_90 = arith.constant 0.000000e+00 : f32
    %117 = vector.broadcast %cst_90 : f32 to vector<4x128xf32>
    %118 = arith.maximumf %116, %117 : vector<4x128xf32>
    %119 = arith.index_cast %c6_i32 : i32 to index
    %c0_91 = arith.constant 0 : index
    %c0_92 = arith.constant 0 : index
    %120 = vector.load %arg6[%119, %c0_91, %c0_92] : memref<8x4x128xf32, #tpu.memory_space<vmem>>, vector<1x4x128xf32>
    %121 = vector.shape_cast %120 : vector<1x4x128xf32> to vector<4x128xf32>
    %122 = vector.shape_cast %118 : vector<4x128xf32> to vector<1x4x128xf32>
    tpu.vector_store %arg6[%119, %c0_91, %c0_92], %122 {strides = array<i32>} : memref<8x4x128xf32, #tpu.memory_space<vmem>>, vector<1x4x128xf32>,
    %c7_i32 = arith.constant 7 : i32
    %123 = arith.index_cast %c7_i32 : i32 to index
    %c0_93 = arith.constant 0 : index
    %c0_94 = arith.constant 0 : index
    %124 = vector.load %arg1[%123, %c0_93, %c0_94] : memref<8x4x16xf32, #tpu.memory_space<vmem>>, vector<1x4x16xf32>
    %125 = vector.shape_cast %124 : vector<1x4x16xf32> to vector<4x16xf32>
    %c0_95 = arith.constant 0 : index
    %c0_96 = arith.constant 0 : index
    %126 = vector.load %arg2[%c0_95, %c0_96] : memref<16x128xf32, #tpu.memory_space<vmem>>, vector<16x128xf32>
    %cst_97 = arith.constant dense<0.000000e+00> : vector<4x128xf32>
    %127 = tpu.matmul %125, %126, %cst_97 {dimension_numbers = #tpu.dot_dimension_numbers<[1], [0], [0], [1], [0, 0, 1, 1], [], []>} : vector<4x16xf32>, vector<16x128xf32>, vector<4x128xf32> -> vector<4x128xf32>
    %c0_98 = arith.constant 0 : index
    %c0_99 = arith.constant 0 : index
    %128 = vector.load %arg4[%c0_98, %c0_99] : memref<1x128xf32, #tpu.memory_space<vmem>>, vector<1x128xf32>
    %129 = vector.broadcast %128 : vector<1x128xf32> to vector<4x128xf32>
    %130 = arith.addf %127, %129 : vector<4x128xf32>
    %c0_100 = arith.constant 0 : index
    %c0_101 = arith.constant 0 : index
    %131 = vector.load %arg3[%c0_100, %c0_101] : memref<128x128xf32, #tpu.memory_space<vmem>>, vector<128x128xf32>
    %cst_102 = arith.constant dense<0.000000e+00> : vector<4x128xf32>
    %132 = tpu.matmul %118, %131, %cst_102 {dimension_numbers = #tpu.dot_dimension_numbers<[1], [0], [0], [1], [0, 0, 1, 1], [], []>} : vector<4x128xf32>, vector<128x128xf32>, vector<4x128xf32> -> vector<4x128xf32>
    %133 = arith.addf %130, %132 : vector<4x128xf32>
    %cst_103 = arith.constant 0.000000e+00 : f32
    %134 = vector.broadcast %cst_103 : f32 to vector<4x128xf32>
    %135 = arith.maximumf %133, %134 : vector<4x128xf32>
    %136 = arith.index_cast %c7_i32 : i32 to index
    %c0_104 = arith.constant 0 : index
    %c0_105 = arith.constant 0 : index
    %137 = vector.load %arg6[%136, %c0_104, %c0_105] : memref<8x4x128xf32, #tpu.memory_space<vmem>>, vector<1x4x128xf32>
    %138 = vector.shape_cast %137 : vector<1x4x128xf32> to vector<4x128xf32>
    %139 = vector.shape_cast %135 : vector<4x128xf32> to vector<1x4x128xf32>
    tpu.vector_store %arg6[%136, %c0_104, %c0_105], %139 {strides = array<i32>} : memref<8x4x128xf32, #tpu.memory_space<vmem>>, vector<1x4x128xf32>,
    %c8_i32 = arith.constant 8 : i32
    %c0_106 = arith.constant 0 : index
    %c0_107 = arith.constant 0 : index
    %140 = vector.load %arg7[%c0_106, %c0_107] : memref<4x128xf32, #tpu.memory_space<vmem>>, vector<4x128xf32>
    tpu.vector_store %arg7[%c0_106, %c0_107], %135 {strides = array<i32>} : memref<4x128xf32, #tpu.memory_space<vmem>>, vector<4x128xf32>,
    return
  }
  func.func @transform_0(%arg0: i32) -> (i32, i32, i32) {
    %c0_i32 = arith.constant 0 : i32
    %c0_i32_0 = arith.constant 0 : i32
    %c0_i32_1 = arith.constant 0 : i32
    return %arg0, %c0_i32, %c0_i32_0 : i32, i32, i32
  }
  func.func @transform_1(%arg0: i32) -> (i32, i32) {
    %c0_i32 = arith.constant 0 : i32
    %c0_i32_0 = arith.constant 0 : i32
    %c0_i32_1 = arith.constant 0 : i32
    return %c0_i32, %c0_i32_0 : i32, i32
  }
  func.func @transform_2(%arg0: i32) -> (i32, i32) {
    %c0_i32 = arith.constant 0 : i32
    %c0_i32_0 = arith.constant 0 : i32
    %c0_i32_1 = arith.constant 0 : i32
    return %c0_i32, %c0_i32_0 : i32, i32
  }
  func.func @transform_3(%arg0: i32) -> (i32, i32) {
    %c0_i32 = arith.constant 0 : i32
    %c0_i32_0 = arith.constant 0 : i32
    %c0_i32_1 = arith.constant 0 : i32
    return %c0_i32, %c0_i32_0 : i32, i32
  }
  func.func @transform_4(%arg0: i32) -> (i32, i32) {
    %c0_i32 = arith.constant 0 : i32
    %c0_i32_0 = arith.constant 0 : i32
    %c0_i32_1 = arith.constant 0 : i32
    return %c0_i32, %c0_i32_0 : i32, i32
  }
  func.func @transform_5(%arg0: i32) -> (i32, i32, i32) {
    %c0_i32 = arith.constant 0 : i32
    %c0_i32_0 = arith.constant 0 : i32
    %c0_i32_1 = arith.constant 0 : i32
    return %arg0, %c0_i32, %c0_i32_0 : i32, i32, i32
  }
}

module attributes {stable_mosaic.version = 11 : i64} {
  func.func @kernel(%arg0: i32, %arg1: memref<8x4x16xf32, #tpu.memory_space<vmem>>, %arg2: memref<16x128xf32, #tpu.memory_space<vmem>>, %arg3: memref<128x128xf32, #tpu.memory_space<vmem>>, %arg4: memref<1x128xf32, #tpu.memory_space<vmem>>, %arg5: memref<4x128xf32, #tpu.memory_space<vmem>>, %arg6: memref<8x4x128xf32, #tpu.memory_space<vmem>>, %arg7: memref<4x128xf32, #tpu.memory_space<vmem>>) attributes {dimension_semantics = [#tpu.dimension_semantics<arbitrary>], iteration_bounds = array<i64: 1>, scalar_prefetch = 0 : i64, scratch_operands = 1 : i64, tpu.core_type = #tpu.core_type<tc>, window_params = [{transform_indices = @transform_0, window_bounds = array<i64: 8, 4, 16>}, {pipeline_mode = #tpu.pipeline_mode<synchronous>, transform_indices = @transform_1, window_bounds = array<i64: 16, 128>}, {pipeline_mode = #tpu.pipeline_mode<synchronous>, transform_indices = @transform_2, window_bounds = array<i64: 128, 128>}, {pipeline_mode = #tpu.pipeline_mode<synchronous>, transform_indices = @transform_3, window_bounds = array<i64: 1, 128>}, {pipeline_mode = #tpu.pipeline_mode<synchronous>, transform_indices = @transform_4, window_bounds = array<i64: 4, 128>}, {transform_indices = @transform_5, window_bounds = array<i64: 8, 4, 128>}]} {
    %c0_i32 = arith.constant 0 : i32
    %0 = arith.cmpi eq, %arg0, %c0_i32 : i32
    %1 = arith.extui %0 : i1 to i32
    %c0_i32_0 = arith.constant 0 : i32
    %2 = arith.cmpi ne, %1, %c0_i32_0 : i32
    scf.if %2 {
      %c0_108 = arith.constant 0 : index
      %c0_109 = arith.constant 0 : index
      %141 = vector.load %arg5[%c0_108, %c0_109] : memref<4x128xf32, #tpu.memory_space<vmem>>, vector<4x128xf32>
      %c0_110 = arith.constant 0 : index
      %c0_111 = arith.constant 0 : index
      %142 = vector.load %arg7[%c0_110, %c0_111] : memref<4x128xf32, #tpu.memory_space<vmem>>, vector<4x128xf32>
      tpu.vector_store %arg7[%c0_110, %c0_111], %141 {strides = array<i32>} : memref<4x128xf32, #tpu.memory_space<vmem>>, vector<4x128xf32>,
    } else {
    }
    %c0 = arith.constant 0 : index
    %c0_1 = arith.constant 0 : index
    %3 = vector.load %arg7[%c0, %c0_1] : memref<4x128xf32, #tpu.memory_space<vmem>>, vector<4x128xf32>
    %c0_i32_2 = arith.constant 0 : i32
    %4 = arith.index_cast %c0_i32_2 : i32 to index
    %c0_3 = arith.constant 0 : index
    %c0_4 = arith.constant 0 : index
    %5 = vector.load %arg1[%4, %c0_3, %c0_4] : memref<8x4x16xf32, #tpu.memory_space<vmem>>, vector<1x4x16xf32>
    %6 = vector.shape_cast %5 : vector<1x4x16xf32> to vector<4x16xf32>
    %c0_5 = arith.constant 0 : index
    %c0_6 = arith.constant 0 : index
    %7 = vector.load %arg2[%c0_5, %c0_6] : memref<16x128xf32, #tpu.memory_space<vmem>>, vector<16x128xf32>
    %cst = arith.constant dense<0.000000e+00> : vector<4x128xf32>
    %8 = tpu.matmul %6, %7, %cst {dimension_numbers = #tpu.dot_dimension_numbers<[1], [0], [0], [1], [0, 0, 1, 1], [], []>} : vector<4x16xf32>, vector<16x128xf32>, vector<4x128xf32> -> vector<4x128xf32>
    %c0_7 = arith.constant 0 : index
    %c0_8 = arith.constant 0 : index
    %9 = vector.load %arg4[%c0_7, %c0_8] : memref<1x128xf32, #tpu.memory_space<vmem>>, vector<1x128xf32>
    %10 = vector.broadcast %9 : vector<1x128xf32> to vector<4x128xf32>
    %11 = arith.addf %8, %10 : vector<4x128xf32>
    %c0_9 = arith.constant 0 : index
    %c0_10 = arith.constant 0 : index
    %12 = vector.load %arg3[%c0_9, %c0_10] : memref<128x128xf32, #tpu.memory_space<vmem>>, vector<128x128xf32>
    %cst_11 = arith.constant dense<0.000000e+00> : vector<4x128xf32>
    %13 = tpu.matmul %3, %12, %cst_11 {dimension_numbers = #tpu.dot_dimension_numbers<[1], [0], [0], [1], [0, 0, 1, 1], [], []>} : vector<4x128xf32>, vector<128x128xf32>, vector<4x128xf32> -> vector<4x128xf32>
    %14 = arith.addf %11, %13 : vector<4x128xf32>
    %cst_12 = arith.constant 0.000000e+00 : f32
    %15 = vector.broadcast %cst_12 : f32 to vector<4x128xf32>
    %16 = arith.maximumf %14, %15 : vector<4x128xf32>
    %17 = arith.index_cast %c0_i32_2 : i32 to index
    %c0_13 = arith.constant 0 : index
    %c0_14 = arith.constant 0 : index
    %18 = vector.load %arg6[%17, %c0_13, %c0_14] : memref<8x4x128xf32, #tpu.memory_space<vmem>>, vector<1x4x128xf32>
    %19 = vector.shape_cast %18 : vector<1x4x128xf32> to vector<4x128xf32>
    %20 = vector.shape_cast %16 : vector<4x128xf32> to vector<1x4x128xf32>
    tpu.vector_store %arg6[%17, %c0_13, %c0_14], %20 {strides = array<i32>} : memref<8x4x128xf32, #tpu.memory_space<vmem>>, vector<1x4x128xf32>,
    %c1_i32 = arith.constant 1 : i32
    %21 = arith.index_cast %c1_i32 : i32 to index
    %c0_15 = arith.constant 0 : index
    %c0_16 = arith.constant 0 : index
    %22 = vector.load %arg1[%21, %c0_15, %c0_16] : memref<8x4x16xf32, #tpu.memory_space<vmem>>, vector<1x4x16xf32>
    %23 = vector.shape_cast %22 : vector<1x4x16xf32> to vector<4x16xf32>
    %c0_17 = arith.constant 0 : index
    %c0_18 = arith.constant 0 : index
    %24 = vector.load %arg2[%c0_17, %c0_18] : memref<16x128xf32, #tpu.memory_space<vmem>>, vector<16x128xf32>
    %cst_19 = arith.constant dense<0.000000e+00> : vector<4x128xf32>
    %25 = tpu.matmul %23, %24, %cst_19 {dimension_numbers = #tpu.dot_dimension_numbers<[1], [0], [0], [1], [0, 0, 1, 1], [], []>} : vector<4x16xf32>, vector<16x128xf32>, vector<4x128xf32> -> vector<4x128xf32>
    %c0_20 = arith.constant 0 : index
    %c0_21 = arith.constant 0 : index
    %26 = vector.load %arg4[%c0_20, %c0_21] : memref<1x128xf32, #tpu.memory_space<vmem>>, vector<1x128xf32>
    %27 = vector.broadcast %26 : vector<1x128xf32> to vector<4x128xf32>
    %28 = arith.addf %25, %27 : vector<4x128xf32>
    %c0_22 = arith.constant 0 : index
    %c0_23 = arith.constant 0 : index
    %29 = vector.load %arg3[%c0_22, %c0_23] : memref<128x128xf32, #tpu.memory_space<vmem>>, vector<128x128xf32>
    %cst_24 = arith.constant dense<0.000000e+00> : vector<4x128xf32>
    %30 = tpu.matmul %16, %29, %cst_24 {dimension_numbers = #tpu.dot_dimension_numbers<[1], [0], [0], [1], [0, 0, 1, 1], [], []>} : vector<4x128xf32>, vector<128x128xf32>, vector<4x128xf32> -> vector<4x128xf32>
    %31 = arith.addf %28, %30 : vector<4x128xf32>
    %cst_25 = arith.constant 0.000000e+00 : f32
    %32 = vector.broadcast %cst_25 : f32 to vector<4x128xf32>
    %33 = arith.maximumf %31, %32 : vector<4x128xf32>
    %34 = arith.index_cast %c1_i32 : i32 to index
    %c0_26 = arith.constant 0 : index
    %c0_27 = arith.constant 0 : index
    %35 = vector.load %arg6[%34, %c0_26, %c0_27] : memref<8x4x128xf32, #tpu.memory_space<vmem>>, vector<1x4x128xf32>
    %36 = vector.shape_cast %35 : vector<1x4x128xf32> to vector<4x128xf32>
    %37 = vector.shape_cast %33 : vector<4x128xf32> to vector<1x4x128xf32>
    tpu.vector_store %arg6[%34, %c0_26, %c0_27], %37 {strides = array<i32>} : memref<8x4x128xf32, #tpu.memory_space<vmem>>, vector<1x4x128xf32>,
    %c2_i32 = arith.constant 2 : i32
    %38 = arith.index_cast %c2_i32 : i32 to index
    %c0_28 = arith.constant 0 : index
    %c0_29 = arith.constant 0 : index
    %39 = vector.load %arg1[%38, %c0_28, %c0_29] : memref<8x4x16xf32, #tpu.memory_space<vmem>>, vector<1x4x16xf32>
    %40 = vector.shape_cast %39 : vector<1x4x16xf32> to vector<4x16xf32>
    %c0_30 = arith.constant 0 : index
    %c0_31 = arith.constant 0 : index
    %41 = vector.load %arg2[%c0_30, %c0_31] : memref<16x128xf32, #tpu.memory_space<vmem>>, vector<16x128xf32>
    %cst_32 = arith.constant dense<0.000000e+00> : vector<4x128xf32>
    %42 = tpu.matmul %40, %41, %cst_32 {dimension_numbers = #tpu.dot_dimension_numbers<[1], [0], [0], [1], [0, 0, 1, 1], [], []>} : vector<4x16xf32>, vector<16x128xf32>, vector<4x128xf32> -> vector<4x128xf32>
    %c0_33 = arith.constant 0 : index
    %c0_34 = arith.constant 0 : index
    %43 = vector.load %arg4[%c0_33, %c0_34] : memref<1x128xf32, #tpu.memory_space<vmem>>, vector<1x128xf32>
    %44 = vector.broadcast %43 : vector<1x128xf32> to vector<4x128xf32>
    %45 = arith.addf %42, %44 : vector<4x128xf32>
    %c0_35 = arith.constant 0 : index
    %c0_36 = arith.constant 0 : index
    %46 = vector.load %arg3[%c0_35, %c0_36] : memref<128x128xf32, #tpu.memory_space<vmem>>, vector<128x128xf32>
    %cst_37 = arith.constant dense<0.000000e+00> : vector<4x128xf32>
    %47 = tpu.matmul %33, %46, %cst_37 {dimension_numbers = #tpu.dot_dimension_numbers<[1], [0], [0], [1], [0, 0, 1, 1], [], []>} : vector<4x128xf32>, vector<128x128xf32>, vector<4x128xf32> -> vector<4x128xf32>
    %48 = arith.addf %45, %47 : vector<4x128xf32>
    %cst_38 = arith.constant 0.000000e+00 : f32
    %49 = vector.broadcast %cst_38 : f32 to vector<4x128xf32>
    %50 = arith.maximumf %48, %49 : vector<4x128xf32>
    %51 = arith.index_cast %c2_i32 : i32 to index
    %c0_39 = arith.constant 0 : index
    %c0_40 = arith.constant 0 : index
    %52 = vector.load %arg6[%51, %c0_39, %c0_40] : memref<8x4x128xf32, #tpu.memory_space<vmem>>, vector<1x4x128xf32>
    %53 = vector.shape_cast %52 : vector<1x4x128xf32> to vector<4x128xf32>
    %54 = vector.shape_cast %50 : vector<4x128xf32> to vector<1x4x128xf32>
    tpu.vector_store %arg6[%51, %c0_39, %c0_40], %54 {strides = array<i32>} : memref<8x4x128xf32, #tpu.memory_space<vmem>>, vector<1x4x128xf32>,
    %c3_i32 = arith.constant 3 : i32
    %55 = arith.index_cast %c3_i32 : i32 to index
    %c0_41 = arith.constant 0 : index
    %c0_42 = arith.constant 0 : index
    %56 = vector.load %arg1[%55, %c0_41, %c0_42] : memref<8x4x16xf32, #tpu.memory_space<vmem>>, vector<1x4x16xf32>
    %57 = vector.shape_cast %56 : vector<1x4x16xf32> to vector<4x16xf32>
    %c0_43 = arith.constant 0 : index
    %c0_44 = arith.constant 0 : index
    %58 = vector.load %arg2[%c0_43, %c0_44] : memref<16x128xf32, #tpu.memory_space<vmem>>, vector<16x128xf32>
    %cst_45 = arith.constant dense<0.000000e+00> : vector<4x128xf32>
    %59 = tpu.matmul %57, %58, %cst_45 {dimension_numbers = #tpu.dot_dimension_numbers<[1], [0], [0], [1], [0, 0, 1, 1], [], []>} : vector<4x16xf32>, vector<16x128xf32>, vector<4x128xf32> -> vector<4x128xf32>
    %c0_46 = arith.constant 0 : index
    %c0_47 = arith.constant 0 : index
    %60 = vector.load %arg4[%c0_46, %c0_47] : memref<1x128xf32, #tpu.memory_space<vmem>>, vector<1x128xf32>
    %61 = vector.broadcast %60 : vector<1x128xf32> to vector<4x128xf32>
    %62 = arith.addf %59, %61 : vector<4x128xf32>
    %c0_48 = arith.constant 0 : index
    %c0_49 = arith.constant 0 : index
    %63 = vector.load %arg3[%c0_48, %c0_49] : memref<128x128xf32, #tpu.memory_space<vmem>>, vector<128x128xf32>
    %cst_50 = arith.constant dense<0.000000e+00> : vector<4x128xf32>
    %64 = tpu.matmul %50, %63, %cst_50 {dimension_numbers = #tpu.dot_dimension_numbers<[1], [0], [0], [1], [0, 0, 1, 1], [], []>} : vector<4x128xf32>, vector<128x128xf32>, vector<4x128xf32> -> vector<4x128xf32>
    %65 = arith.addf %62, %64 : vector<4x128xf32>
    %cst_51 = arith.constant 0.000000e+00 : f32
    %66 = vector.broadcast %cst_51 : f32 to vector<4x128xf32>
    %67 = arith.maximumf %65, %66 : vector<4x128xf32>
    %68 = arith.index_cast %c3_i32 : i32 to index
    %c0_52 = arith.constant 0 : index
    %c0_53 = arith.constant 0 : index
    %69 = vector.load %arg6[%68, %c0_52, %c0_53] : memref<8x4x128xf32, #tpu.memory_space<vmem>>, vector<1x4x128xf32>
    %70 = vector.shape_cast %69 : vector<1x4x128xf32> to vector<4x128xf32>
    %71 = vector.shape_cast %67 : vector<4x128xf32> to vector<1x4x128xf32>
    tpu.vector_store %arg6[%68, %c0_52, %c0_53], %71 {strides = array<i32>} : memref<8x4x128xf32, #tpu.memory_space<vmem>>, vector<1x4x128xf32>,
    %c4_i32 = arith.constant 4 : i32
    %72 = arith.index_cast %c4_i32 : i32 to index
    %c0_54 = arith.constant 0 : index
    %c0_55 = arith.constant 0 : index
    %73 = vector.load %arg1[%72, %c0_54, %c0_55] : memref<8x4x16xf32, #tpu.memory_space<vmem>>, vector<1x4x16xf32>
    %74 = vector.shape_cast %73 : vector<1x4x16xf32> to vector<4x16xf32>
    %c0_56 = arith.constant 0 : index
    %c0_57 = arith.constant 0 : index
    %75 = vector.load %arg2[%c0_56, %c0_57] : memref<16x128xf32, #tpu.memory_space<vmem>>, vector<16x128xf32>
    %cst_58 = arith.constant dense<0.000000e+00> : vector<4x128xf32>
    %76 = tpu.matmul %74, %75, %cst_58 {dimension_numbers = #tpu.dot_dimension_numbers<[1], [0], [0], [1], [0, 0, 1, 1], [], []>} : vector<4x16xf32>, vector<16x128xf32>, vector<4x128xf32> -> vector<4x128xf32>
    %c0_59 = arith.constant 0 : index
    %c0_60 = arith.constant 0 : index
    %77 = vector.load %arg4[%c0_59, %c0_60] : memref<1x128xf32, #tpu.memory_space<vmem>>, vector<1x128xf32>
    %78 = vector.broadcast %77 : vector<1x128xf32> to vector<4x128xf32>
    %79 = arith.addf %76, %78 : vector<4x128xf32>
    %c0_61 = arith.constant 0 : index
    %c0_62 = arith.constant 0 : index
    %80 = vector.load %arg3[%c0_61, %c0_62] : memref<128x128xf32, #tpu.memory_space<vmem>>, vector<128x128xf32>
    %cst_63 = arith.constant dense<0.000000e+00> : vector<4x128xf32>
    %81 = tpu.matmul %67, %80, %cst_63 {dimension_numbers = #tpu.dot_dimension_numbers<[1], [0], [0], [1], [0, 0, 1, 1], [], []>} : vector<4x128xf32>, vector<128x128xf32>, vector<4x128xf32> -> vector<4x128xf32>
    %82 = arith.addf %79, %81 : vector<4x128xf32>
    %cst_64 = arith.constant 0.000000e+00 : f32
    %83 = vector.broadcast %cst_64 : f32 to vector<4x128xf32>
    %84 = arith.maximumf %82, %83 : vector<4x128xf32>
    %85 = arith.index_cast %c4_i32 : i32 to index
    %c0_65 = arith.constant 0 : index
    %c0_66 = arith.constant 0 : index
    %86 = vector.load %arg6[%85, %c0_65, %c0_66] : memref<8x4x128xf32, #tpu.memory_space<vmem>>, vector<1x4x128xf32>
    %87 = vector.shape_cast %86 : vector<1x4x128xf32> to vector<4x128xf32>
    %88 = vector.shape_cast %84 : vector<4x128xf32> to vector<1x4x128xf32>
    tpu.vector_store %arg6[%85, %c0_65, %c0_66], %88 {strides = array<i32>} : memref<8x4x128xf32, #tpu.memory_space<vmem>>, vector<1x4x128xf32>,
    %c5_i32 = arith.constant 5 : i32
    %89 = arith.index_cast %c5_i32 : i32 to index
    %c0_67 = arith.constant 0 : index
    %c0_68 = arith.constant 0 : index
    %90 = vector.load %arg1[%89, %c0_67, %c0_68] : memref<8x4x16xf32, #tpu.memory_space<vmem>>, vector<1x4x16xf32>
    %91 = vector.shape_cast %90 : vector<1x4x16xf32> to vector<4x16xf32>
    %c0_69 = arith.constant 0 : index
    %c0_70 = arith.constant 0 : index
    %92 = vector.load %arg2[%c0_69, %c0_70] : memref<16x128xf32, #tpu.memory_space<vmem>>, vector<16x128xf32>
    %cst_71 = arith.constant dense<0.000000e+00> : vector<4x128xf32>
    %93 = tpu.matmul %91, %92, %cst_71 {dimension_numbers = #tpu.dot_dimension_numbers<[1], [0], [0], [1], [0, 0, 1, 1], [], []>} : vector<4x16xf32>, vector<16x128xf32>, vector<4x128xf32> -> vector<4x128xf32>
    %c0_72 = arith.constant 0 : index
    %c0_73 = arith.constant 0 : index
    %94 = vector.load %arg4[%c0_72, %c0_73] : memref<1x128xf32, #tpu.memory_space<vmem>>, vector<1x128xf32>
    %95 = vector.broadcast %94 : vector<1x128xf32> to vector<4x128xf32>
    %96 = arith.addf %93, %95 : vector<4x128xf32>
    %c0_74 = arith.constant 0 : index
    %c0_75 = arith.constant 0 : index
    %97 = vector.load %arg3[%c0_74, %c0_75] : memref<128x128xf32, #tpu.memory_space<vmem>>, vector<128x128xf32>
    %cst_76 = arith.constant dense<0.000000e+00> : vector<4x128xf32>
    %98 = tpu.matmul %84, %97, %cst_76 {dimension_numbers = #tpu.dot_dimension_numbers<[1], [0], [0], [1], [0, 0, 1, 1], [], []>} : vector<4x128xf32>, vector<128x128xf32>, vector<4x128xf32> -> vector<4x128xf32>
    %99 = arith.addf %96, %98 : vector<4x128xf32>
    %cst_77 = arith.constant 0.000000e+00 : f32
    %100 = vector.broadcast %cst_77 : f32 to vector<4x128xf32>
    %101 = arith.maximumf %99, %100 : vector<4x128xf32>
    %102 = arith.index_cast %c5_i32 : i32 to index
    %c0_78 = arith.constant 0 : index
    %c0_79 = arith.constant 0 : index
    %103 = vector.load %arg6[%102, %c0_78, %c0_79] : memref<8x4x128xf32, #tpu.memory_space<vmem>>, vector<1x4x128xf32>
    %104 = vector.shape_cast %103 : vector<1x4x128xf32> to vector<4x128xf32>
    %105 = vector.shape_cast %101 : vector<4x128xf32> to vector<1x4x128xf32>
    tpu.vector_store %arg6[%102, %c0_78, %c0_79], %105 {strides = array<i32>} : memref<8x4x128xf32, #tpu.memory_space<vmem>>, vector<1x4x128xf32>,
    %c6_i32 = arith.constant 6 : i32
    %106 = arith.index_cast %c6_i32 : i32 to index
    %c0_80 = arith.constant 0 : index
    %c0_81 = arith.constant 0 : index
    %107 = vector.load %arg1[%106, %c0_80, %c0_81] : memref<8x4x16xf32, #tpu.memory_space<vmem>>, vector<1x4x16xf32>
    %108 = vector.shape_cast %107 : vector<1x4x16xf32> to vector<4x16xf32>
    %c0_82 = arith.constant 0 : index
    %c0_83 = arith.constant 0 : index
    %109 = vector.load %arg2[%c0_82, %c0_83] : memref<16x128xf32, #tpu.memory_space<vmem>>, vector<16x128xf32>
    %cst_84 = arith.constant dense<0.000000e+00> : vector<4x128xf32>
    %110 = tpu.matmul %108, %109, %cst_84 {dimension_numbers = #tpu.dot_dimension_numbers<[1], [0], [0], [1], [0, 0, 1, 1], [], []>} : vector<4x16xf32>, vector<16x128xf32>, vector<4x128xf32> -> vector<4x128xf32>
    %c0_85 = arith.constant 0 : index
    %c0_86 = arith.constant 0 : index
    %111 = vector.load %arg4[%c0_85, %c0_86] : memref<1x128xf32, #tpu.memory_space<vmem>>, vector<1x128xf32>
    %112 = vector.broadcast %111 : vector<1x128xf32> to vector<4x128xf32>
    %113 = arith.addf %110, %112 : vector<4x128xf32>
    %c0_87 = arith.constant 0 : index
    %c0_88 = arith.constant 0 : index
    %114 = vector.load %arg3[%c0_87, %c0_88] : memref<128x128xf32, #tpu.memory_space<vmem>>, vector<128x128xf32>
    %cst_89 = arith.constant dense<0.000000e+00> : vector<4x128xf32>
    %115 = tpu.matmul %101, %114, %cst_89 {dimension_numbers = #tpu.dot_dimension_numbers<[1], [0], [0], [1], [0, 0, 1, 1], [], []>} : vector<4x128xf32>, vector<128x128xf32>, vector<4x128xf32> -> vector<4x128xf32>
    %116 = arith.addf %113, %115 : vector<4x128xf32>
    %cst_90 = arith.constant 0.000000e+00 : f32
    %117 = vector.broadcast %cst_90 : f32 to vector<4x128xf32>
    %118 = arith.maximumf %116, %117 : vector<4x128xf32>
    %119 = arith.index_cast %c6_i32 : i32 to index
    %c0_91 = arith.constant 0 : index
    %c0_92 = arith.constant 0 : index
    %120 = vector.load %arg6[%119, %c0_91, %c0_92] : memref<8x4x128xf32, #tpu.memory_space<vmem>>, vector<1x4x128xf32>
    %121 = vector.shape_cast %120 : vector<1x4x128xf32> to vector<4x128xf32>
    %122 = vector.shape_cast %118 : vector<4x128xf32> to vector<1x4x128xf32>
    tpu.vector_store %arg6[%119, %c0_91, %c0_92], %122 {strides = array<i32>} : memref<8x4x128xf32, #tpu.memory_space<vmem>>, vector<1x4x128xf32>,
    %c7_i32 = arith.constant 7 : i32
    %123 = arith.index_cast %c7_i32 : i32 to index
    %c0_93 = arith.constant 0 : index
    %c0_94 = arith.constant 0 : index
    %124 = vector.load %arg1[%123, %c0_93, %c0_94] : memref<8x4x16xf32, #tpu.memory_space<vmem>>, vector<1x4x16xf32>
    %125 = vector.shape_cast %124 : vector<1x4x16xf32> to vector<4x16xf32>
    %c0_95 = arith.constant 0 : index
    %c0_96 = arith.constant 0 : index
    %126 = vector.load %arg2[%c0_95, %c0_96] : memref<16x128xf32, #tpu.memory_space<vmem>>, vector<16x128xf32>
    %cst_97 = arith.constant dense<0.000000e+00> : vector<4x128xf32>
    %127 = tpu.matmul %125, %126, %cst_97 {dimension_numbers = #tpu.dot_dimension_numbers<[1], [0], [0], [1], [0, 0, 1, 1], [], []>} : vector<4x16xf32>, vector<16x128xf32>, vector<4x128xf32> -> vector<4x128xf32>
    %c0_98 = arith.constant 0 : index
    %c0_99 = arith.constant 0 : index
    %128 = vector.load %arg4[%c0_98, %c0_99] : memref<1x128xf32, #tpu.memory_space<vmem>>, vector<1x128xf32>
    %129 = vector.broadcast %128 : vector<1x128xf32> to vector<4x128xf32>
    %130 = arith.addf %127, %129 : vector<4x128xf32>
    %c0_100 = arith.constant 0 : index
    %c0_101 = arith.constant 0 : index
    %131 = vector.load %arg3[%c0_100, %c0_101] : memref<128x128xf32, #tpu.memory_space<vmem>>, vector<128x128xf32>
    %cst_102 = arith.constant dense<0.000000e+00> : vector<4x128xf32>
    %132 = tpu.matmul %118, %131, %cst_102 {dimension_numbers = #tpu.dot_dimension_numbers<[1], [0], [0], [1], [0, 0, 1, 1], [], []>} : vector<4x128xf32>, vector<128x128xf32>, vector<4x128xf32> -> vector<4x128xf32>
    %133 = arith.addf %130, %132 : vector<4x128xf32>
    %cst_103 = arith.constant 0.000000e+00 : f32
    %134 = vector.broadcast %cst_103 : f32 to vector<4x128xf32>
    %135 = arith.maximumf %133, %134 : vector<4x128xf32>
    %136 = arith.index_cast %c7_i32 : i32 to index
    %c0_104 = arith.constant 0 : index
    %c0_105 = arith.constant 0 : index
    %137 = vector.load %arg6[%136, %c0_104, %c0_105] : memref<8x4x128xf32, #tpu.memory_space<vmem>>, vector<1x4x128xf32>
    %138 = vector.shape_cast %137 : vector<1x4x128xf32> to vector<4x128xf32>
    %139 = vector.shape_cast %135 : vector<4x128xf32> to vector<1x4x128xf32>
    tpu.vector_store %arg6[%136, %c0_104, %c0_105], %139 {strides = array<i32>} : memref<8x4x128xf32, #tpu.memory_space<vmem>>, vector<1x4x128xf32>,
    %c8_i32 = arith.constant 8 : i32
    %c0_106 = arith.constant 0 : index
    %c0_107 = arith.constant 0 : index
    %140 = vector.load %arg7[%c0_106, %c0_107] : memref<4x128xf32, #tpu.memory_space<vmem>>, vector<4x128xf32>
    tpu.vector_store %arg7[%c0_106, %c0_107], %135 {strides = array<i32>} : memref<4x128xf32, #tpu.memory_space<vmem>>, vector<4x128xf32>,
    return
  }
  func.func @transform_0(%arg0: i32) -> (i32, i32, i32) {
    %c0_i32 = arith.constant 0 : i32
    %c0_i32_0 = arith.constant 0 : i32
    %c0_i32_1 = arith.constant 0 : i32
    return %arg0, %c0_i32, %c0_i32_0 : i32, i32, i32
  }
  func.func @transform_1(%arg0: i32) -> (i32, i32) {
    %c0_i32 = arith.constant 0 : i32
    %c0_i32_0 = arith.constant 0 : i32
    %c0_i32_1 = arith.constant 0 : i32
    return %c0_i32, %c0_i32_0 : i32, i32
  }
  func.func @transform_2(%arg0: i32) -> (i32, i32) {
    %c0_i32 = arith.constant 0 : i32
    %c0_i32_0 = arith.constant 0 : i32
    %c0_i32_1 = arith.constant 0 : i32
    return %c0_i32, %c0_i32_0 : i32, i32
  }
  func.func @transform_3(%arg0: i32) -> (i32, i32) {
    %c0_i32 = arith.constant 0 : i32
    %c0_i32_0 = arith.constant 0 : i32
    %c0_i32_1 = arith.constant 0 : i32
    return %c0_i32, %c0_i32_0 : i32, i32
  }
  func.func @transform_4(%arg0: i32) -> (i32, i32) {
    %c0_i32 = arith.constant 0 : i32
    %c0_i32_0 = arith.constant 0 : i32
    %c0_i32_1 = arith.constant 0 : i32
    return %c0_i32, %c0_i32_0 : i32, i32
  }
  func.func @transform_5(%arg0: i32) -> (i32, i32, i32) {
    %c0_i32 = arith.constant 0 : i32
    %c0_i32_0 = arith.constant 0 : i32
    %c0_i32_1 = arith.constant 0 : i32
    return %arg0, %c0_i32, %c0_i32_0 : i32, i32, i32
  }
}

</mosaic_0001>

<bundles_post_ra>
// kernel: tpu_custom_call.1
= control target key start
LH: loop header
LB: loop body
LE: loop exit
PB: predicated region body
PF: predicated region fallthrough
CT: control target
= control target key end

     0   :  { %10 = vsyncpa [#allocation4], 0  ;;  %s1103_s0 = inlined_call_operand.hbm [shape: f32[8,4,16], index: 0, kind: input, shape index: {}]   ;;  %s1104_s1 = inlined_call_operand.hbm [shape: f32[16,128], index: 1, kind: input, shape index: {}]   ;;  %s1105_s2 = inlined_call_operand.hbm [shape: f32[128,128], index: 2, kind: input, shape index: {}]   ;;  %s1106_s3 = inlined_call_operand.vmem [shape: f32[1,128], index: 3, kind: input, shape index: {}]   ;;  %s1107_s4 = inlined_call_operand.hbm [shape: f32[4,128], index: 4, kind: input, shape index: {}]   ;;  %s1108_s5 = inlined_call_operand.hbm [shape: f32[8,4,128], index: 5, kind: output, shape index: {}]  }
   0x1   :  { %11 = vsyncpa [#allocation7], 0 }
   0x2   :  { %12 = vsyncpa [#allocation10], 0  ;;  %s31_s20 = sshll.u32 %s1104_s1, 4  ;;  %s32_s20 = int_to_ptr.hbm [resolvable:$true] %s31_s20 }
   0x3   :  { %13 = vsyncpa [#allocation5], 0  ;;  %s831_s21 = smov [#allocation6]   ;;  %s18_s25 = sshll.u32 %s1103_s0, 4  ;;  %s19_s25 = int_to_ptr.hbm [resolvable:$true] %s18_s25 }
   0x4   :  { %s33_s22 = sshll.u32 %s831_s21, 4  ;;  %s832_s26 = smov 128   ;;  %s34_s22 = int_to_ptr.vmem [resolvable:$true] %s33_s22 }
   0x5   :  { %s833_s27 = smov 8   ;;  %s834_s28 = smov [#allocation3]  }
   0x6   :  { %39 = dma.hbm_to_vmem [thread:$0]  %s32_s20, 256, %s34_s22, [#allocation7], %s832_s26, %s832_s26, %s833_s27  }
   0x7   :  { %s20_s29 = sshll.u32 %s834_s28, 4  ;;  %s835_s30 = smov 64   ;;  %s21_s29 = int_to_ptr.vmem [resolvable:$true] %s20_s29 }
   0x8   :  { %s836_s6 = smov 4   ;;  %s44_s8 = sshll.u32 %s1105_s2, 4  ;;  %s45_s8 = int_to_ptr.hbm [resolvable:$true] %s44_s8 }
   0x9   :  { %26 = dma.hbm_to_vmem [thread:$0]  %s19_s25, 512, %s21_s29, [#allocation4], %s835_s30, %s835_s30, %s836_s6  }
   0xa   :  { %s837_s9 = smov [#allocation8]   ;;  %s60_s12 = sshll.u32 %s1107_s4, 4  ;;  %s61_s12 = int_to_ptr.hbm [resolvable:$true] %s60_s12 }
   0xb   :  { %s46_s0 = sshll.u32 %s837_s9, 4  ;;  %s838_s13 = smov [#allocation9]   ;;  %s47_s0 = int_to_ptr.vmem [resolvable:$true] %s46_s0 }
   0xc   :  { %52 = dma.hbm_to_vmem [thread:$0]  %s45_s8, 2048, %s47_s0, [#allocation7], %s832_s26, %s832_s26, %s833_s27  }
   0xd   :  { %s62_s14 = sshll.u32 %s838_s13, 4  ;;  %s63_s14 = int_to_ptr.vmem [resolvable:$true] %s62_s14 }
   0xe   :  { %65 = dma.hbm_to_vmem [thread:$0]  %s61_s12, 64, %s63_s14, [#allocation10]  }
   0xf   :  { %823 = dma.done.wait [#allocation4], 512  }
  0x10   :  { %824 = vsyncadd [#allocation4], 4294966784 }
  0x11   :  { %825 = dma.done.wait [#allocation7], 2304  }
  0x12   :  { %826 = vsyncadd [#allocation7], 4294964992 }
  0x13   :  { %827 = dma.done.wait [#allocation10], 64  }
  0x14   :  { %828 = vsyncadd [#allocation10], 4294967232  ;;  %v885_v0 = vld [vmem:[#allocation6 + $0x8] sm:$0xff]  ;;  %v887_v1 = vld [vmem:[#allocation6] sm:$0xff]  ;;  %vm96_vm0 = vcmask 130048   ;;  %s839_s29 = smov [#allocation11]  }
  0x15   :  { %114 = vmatpush.msra.mxu1 %v885_v0  ;;  %v890_v2 = vld [vmem:[#allocation8 + $0x78] sm:$0xff]  ;;  %184 = vmatpush.msra.mxu3 %v885_v0  ;;  %v896_v3 = vld [vmem:[#allocation8 + $0x70] sm:$0xff]  ;;  %v901_v5 = vld [vmem:[#allocation8 + $0x68] sm:$0xff]  ;;  %s661_s1 = sshll.u32 %s839_s29, 4  ;;  %s663_s9 = sshll.u32 %s1108_s5, 4  ;;  %s662_s1 = int_to_ptr.vmem [resolvable:$true] %s661_s1  ;;  %s664_s9 = int_to_ptr.hbm [resolvable:$true] %s663_s9 }
  0x16   :  { %277 = vmatpush.msra.mxu2 %v890_v2  ;;  %255 = vmatpush.msra.mxu0 %v885_v0  ;;  %v89_v4 = vld [vmem:[#allocation3] sm:$0xf]  ;;  %v86_v6 = vld [vmem:[#allocation9] sm:$0xf]  ;;  %v909_v8 = vld [vmem:[#allocation8 + $0x58] sm:$0xff] }
  0x17   :  { %115 = vmatpush.msra.mxu1 %v887_v1  ;;  %185 = vmatpush.msra.mxu3 %v887_v1  ;;  %v907_v7 = vld [vmem:[#allocation8 + $0x60] sm:$0xff]  ;;  %87 = vst [vmem:[#allocation2] sm:$0xf] %v86_v6  ;;  %v919_v9 = vld [vmem:[#allocation8 + $0x50] sm:$0xff]  ;;  %v925_v10 = vld [vmem:[#allocation8 + $0x48] sm:$0xff] }
  0x18   :  { %678 = vmatmul.msk.f32.vlgmr.msra.gmra.mxu1 %vm96_vm0, %v89_v4  ;;  %278 = vmatpush.msra.mxu2 %v896_v3  ;;  %v930_v11 = vld [vmem:[#allocation8 + $0x40] sm:$0xff]  ;;  %v935_v12 = vld [vmem:[#allocation8 + $0x38] sm:$0xff]  ;;  %v940_v13 = vld [vmem:[#allocation8 + $0x30] sm:$0xff] }
  0x19   :  { %136 = vmatpush.msrb.mxu1 %v890_v2  ;;  %206 = vmatpush.msrb.mxu3 %v890_v2  ;;  %v945_v14 = vld [vmem:[#allocation8 + $0x28] sm:$0xff]  ;;  %v950_v15 = vld [vmem:[#allocation8 + $0x20] sm:$0xff]  ;;  %v955_v16 = vld [vmem:[#allocation8 + $0x18] sm:$0xff] }
  0x1a   :  { %279 = vmatpush.msra.mxu2 %v901_v5  ;;  %256 = vmatpush.msra.mxu0 %v887_v1  ;;  %v960_v17 = vld [vmem:[#allocation8 + $0x10] sm:$0xff]  ;;  %v965_v18 = vld [vmem:[#allocation8 + $0x8] sm:$0xff]  ;;  %v970_v19 = vld [vmem:[#allocation8] sm:$0xff] }
  0x1b   :  { %137 = vmatpush.msrb.mxu1 %v896_v3  ;;  %207 = vmatpush.msrb.mxu3 %v896_v3  ;;  %v160_v21 = vld [vmem:[#allocation3 + $0x4] sm:$0xf]  ;;  %v695_v23 = vld [vmem:[%s1106_s3] ss:$0 sm:$0xff]  ;;  %v231_v28 = vld [vmem:[#allocation3 + $0x8] sm:$0xf] }
  0x1c   :  { %280 = vmatpush.msra.mxu2 %v907_v7  ;;  %326 = vmatpush.msrb.mxu0 %v885_v0  ;;  %v302_v29 = vld [vmem:[#allocation3 + $0xc] sm:$0xf]  ;;  %v696_v31 = vld [vmem:[%s1106_s3] ss:$0 sm:$0xff]  ;;  %v373_v42 = vld [vmem:[#allocation3 + $0x10] sm:$0xf] }
  0x1d   :  { %138 = vmatpush.msrb.mxu1 %v901_v5  ;;  %208 = vmatpush.msrb.mxu3 %v901_v5  ;;  %v697_v36 = vld [vmem:[%s1106_s3] ss:$0 sm:$0xff]  ;;  %v444_v49 = vld [vmem:[#allocation3 + $0x14] sm:$0xf]  ;;  %v515_v50 = vld [vmem:[#allocation3 + $0x18] sm:$0xf] }
  0x1e   :  { %281 = vmatpush.msra.mxu2 %v909_v8  ;;  %327 = vmatpush.msrb.mxu0 %v887_v1  ;;  %v88_v20 = vld [vmem:[#allocation2] sm:$0xf] }
  0x1f   :  { %139 = vmatpush.msrb.mxu1 %v907_v7  ;;  %209 = vmatpush.msrb.mxu3 %v907_v7  ;;  %v698_v44 = vld [vmem:[%s1106_s3] ss:$0 sm:$0xff] }
  0x20   :  { %282 = vmatpush.msra.mxu2 %v919_v9  ;;  %679 = vmatmul.msk.f32.vlgmr.msra.gmra.mxu3 %vm96_vm0, %v160_v21  ;;  %v699_v51 = vld [vmem:[%s1106_s3] ss:$0 sm:$0xff] }
  0x21   :  { %140 = vmatpush.msrb.mxu1 %v909_v8  ;;  %210 = vmatpush.msrb.mxu3 %v909_v8  ;;  %v586_v57 = vld [vmem:[#allocation3 + $0x1c] sm:$0xf] }
  0x22   :  { %283 = vmatpush.msra.mxu2 %v925_v10  ;;  %680 = vmatmul.msk.f32.vlgmr.msra.gmra.mxu0 %vm96_vm0, %v231_v28  ;;  %v700_v58 = vld [vmem:[%s1106_s3] ss:$0 sm:$0xff] }
  0x23   :  { %141 = vmatpush.msrb.mxu1 %v919_v9  ;;  %211 = vmatpush.msrb.mxu3 %v919_v9 }
  0x24   :  { %284 = vmatpush.msra.mxu2 %v930_v11  ;;  %348 = vmatpush.msra.mxu0 %v890_v2 }
  0x25   :  { %142 = vmatpush.msrb.mxu1 %v925_v10  ;;  %212 = vmatpush.msrb.mxu3 %v925_v10 }
  0x26   :  { %285 = vmatpush.msra.mxu2 %v935_v12  ;;  %349 = vmatpush.msra.mxu0 %v896_v3 }
  0x27   :  { %143 = vmatpush.msrb.mxu1 %v930_v11  ;;  %213 = vmatpush.msrb.mxu3 %v930_v11 }
  0x28   :  { %286 = vmatpush.msra.mxu2 %v940_v13  ;;  %350 = vmatpush.msra.mxu0 %v901_v5 }
  0x29   :  { %144 = vmatpush.msrb.mxu1 %v935_v12  ;;  %214 = vmatpush.msrb.mxu3 %v935_v12 }
  0x2a   :  { %287 = vmatpush.msra.mxu2 %v945_v14  ;;  %351 = vmatpush.msra.mxu0 %v907_v7 }
  0x2b   :  { %145 = vmatpush.msrb.mxu1 %v940_v13  ;;  %215 = vmatpush.msrb.mxu3 %v940_v13 }
  0x2c   :  { %288 = vmatpush.msra.mxu2 %v950_v15  ;;  %681 = vmatmul.msk.f32.vlgmr.msrb.gmra.mxu0 %vm96_vm0, %v302_v29 }
  0x2d   :  { %146 = vmatpush.msrb.mxu1 %v945_v14  ;;  %216 = vmatpush.msrb.mxu3 %v945_v14 }
  0x2e   :  { %289 = vmatpush.msra.mxu2 %v955_v16  ;;  %352 = vmatpush.msra.mxu0 %v909_v8 }
  0x2f   :  { %147 = vmatpush.msrb.mxu1 %v950_v15  ;;  %217 = vmatpush.msrb.mxu3 %v950_v15 }
  0x30   :  { %290 = vmatpush.msra.mxu2 %v960_v17  ;;  %353 = vmatpush.msra.mxu0 %v919_v9 }
  0x31   :  { %148 = vmatpush.msrb.mxu1 %v955_v16  ;;  %218 = vmatpush.msrb.mxu3 %v955_v16 }
  0x32   :  { %291 = vmatpush.msra.mxu2 %v965_v18  ;;  %354 = vmatpush.msra.mxu0 %v925_v10 }
  0x33   :  { %149 = vmatpush.msrb.mxu1 %v960_v17  ;;  %219 = vmatpush.msrb.mxu3 %v960_v17 }
  0x34   :  { %292 = vmatpush.msra.mxu2 %v970_v19  ;;  %355 = vmatpush.msra.mxu0 %v930_v11 }
  0x35   :  { %150 = vmatpush.msrb.mxu1 %v965_v18  ;;  %220 = vmatpush.msrb.mxu3 %v965_v18 }
  0x36   :  { %539 = vmatpush.msrb.mxu2 %v885_v0  ;;  %356 = vmatpush.msra.mxu0 %v935_v12 }
  0x37   :  { %151 = vmatpush.msrb.mxu1 %v970_v19  ;;  %221 = vmatpush.msrb.mxu3 %v970_v19 }
  0x38   :  { %152 = vmatmul.f32.vlgmr.msrb.gmra.mxu1 %v88_v20  ;;  %540 = vmatpush.msrb.mxu2 %v887_v1 }
  0x39   :  { %397 = vmatpush.msra.mxu1 %v885_v0  ;;  %419 = vmatpush.msra.mxu3 %v890_v2 }
  0x3a   :  { %357 = vmatpush.msra.mxu0 %v940_v13 }
  0x3b   :  { %398 = vmatpush.msra.mxu1 %v887_v1  ;;  %420 = vmatpush.msra.mxu3 %v896_v3 }
  0x3c   :  { %358 = vmatpush.msra.mxu0 %v945_v14 }
  0x3d   :  { %490 = vmatpush.msrb.mxu1 %v890_v2  ;;  %421 = vmatpush.msra.mxu3 %v901_v5 }
  0x3e   :  { %359 = vmatpush.msra.mxu0 %v950_v15 }
  0x3f   :  { %491 = vmatpush.msrb.mxu1 %v896_v3  ;;  %422 = vmatpush.msra.mxu3 %v907_v7 }
  0x40   :  { %360 = vmatpush.msra.mxu0 %v955_v16  ;;  %682 = vmatmul.msk.f32.vlgmr.msra.gmra.mxu1 %vm96_vm0, %v373_v42 }
  0x41   :  { %492 = vmatpush.msrb.mxu1 %v901_v5  ;;  %423 = vmatpush.msra.mxu3 %v909_v8 }
  0x42   :  { %361 = vmatpush.msra.mxu0 %v960_v17 }
  0x43   :  { %493 = vmatpush.msrb.mxu1 %v907_v7  ;;  %424 = vmatpush.msra.mxu3 %v919_v9 }
  0x44   :  { %362 = vmatpush.msra.mxu0 %v965_v18 }
  0x45   :  { %494 = vmatpush.msrb.mxu1 %v909_v8  ;;  %425 = vmatpush.msra.mxu3 %v925_v10 }
  0x46   :  { %363 = vmatpush.msra.mxu0 %v970_v19 }
  0x47   :  { %495 = vmatpush.msrb.mxu1 %v919_v9  ;;  %426 = vmatpush.msra.mxu3 %v930_v11 }
  0x48   :  { %561 = vmatpush.msrb.mxu0 %v890_v2 }
  0x49   :  { %496 = vmatpush.msrb.mxu1 %v925_v10  ;;  %427 = vmatpush.msra.mxu3 %v935_v12 }
  0x4a   :  { %562 = vmatpush.msrb.mxu0 %v896_v3 }
  0x4b   :  { %497 = vmatpush.msrb.mxu1 %v930_v11  ;;  %428 = vmatpush.msra.mxu3 %v940_v13 }
  0x4c   :  { %563 = vmatpush.msrb.mxu0 %v901_v5 }
  0x4d   :  { %498 = vmatpush.msrb.mxu1 %v935_v12  ;;  %429 = vmatpush.msra.mxu3 %v945_v14 }
  0x4e   :  { %564 = vmatpush.msrb.mxu0 %v907_v7 }
  0x4f   :  { %499 = vmatpush.msrb.mxu1 %v940_v13  ;;  %430 = vmatpush.msra.mxu3 %v950_v15 }
  0x50   :  { %565 = vmatpush.msrb.mxu0 %v909_v8 }
  0x51   :  { %500 = vmatpush.msrb.mxu1 %v945_v14  ;;  %431 = vmatpush.msra.mxu3 %v955_v16 }
  0x52   :  { %566 = vmatpush.msrb.mxu0 %v919_v9 }
  0x53   :  { %501 = vmatpush.msrb.mxu1 %v950_v15  ;;  %432 = vmatpush.msra.mxu3 %v960_v17 }
  0x54   :  { %567 = vmatpush.msrb.mxu0 %v925_v10 }
  0x55   :  { %502 = vmatpush.msrb.mxu1 %v955_v16  ;;  %433 = vmatpush.msra.mxu3 %v965_v18 }
  0x56   :  { %568 = vmatpush.msrb.mxu0 %v930_v11 }
  0x57   :  { %503 = vmatpush.msrb.mxu1 %v960_v17  ;;  %434 = vmatpush.msra.mxu3 %v970_v19 }
  0x58   :  { %569 = vmatpush.msrb.mxu0 %v935_v12 }
  0x59   :  { %504 = vmatpush.msrb.mxu1 %v965_v18 }
  0x5a   :  { %570 = vmatpush.msrb.mxu0 %v940_v13 }
  0x5b   :  { %505 = vmatpush.msrb.mxu1 %v970_v19 }
  0x5c   :  { %571 = vmatpush.msrb.mxu0 %v945_v14 }
  0x5e   :  { %572 = vmatpush.msrb.mxu0 %v950_v15 }
  0x60   :  { %573 = vmatpush.msrb.mxu0 %v955_v16 }
  0x62   :  { %574 = vmatpush.msrb.mxu0 %v960_v17 }
  0x64   :  { %575 = vmatpush.msrb.mxu0 %v965_v18 }
  0x66   :  { %576 = vmatpush.msrb.mxu0 %v970_v19 }
  0x95   :  { %v117_v22 = vpop.f32.mrf.mxu1 }
  0x96   :  { %v118_v24 = vadd.f32 %v695_v23, %v117_v22 }
  0x9f   :  { %v258_v37 = vpop.f32.mrf.mxu0 }
  0xa0   :  { %v259_v38 = vadd.f32 %v697_v36, %v258_v37 }
  0xa3   :  { %v187_v30 = vpop.f32.mrf.mxu3 }
  0xa4   :  { %v188_v32 = vadd.f32 %v696_v31, %v187_v30 }
  0xa9   :  { %v329_v43 = vpop.f32.mrf.mxu0 }
  0xaa   :  { %v330_v45 = vadd.f32 %v698_v44, %v329_v43 }
  0xb5   :  { %v153_v25 = vpop.f32.mrf.mxu1 }
  0xb6   :  { %v156_v26 = vadd.f32 %v153_v25, %v118_v24 }
  0xb8   :  { %v157_v27 = vmax.f32 %v156_v26, 0.0 }
  0xba   :  { %158 = vst [vmem:[#allocation11] sm:$0xf] %v157_v27  ;;  %222 = vmatmul.f32.vlgmr.msrb.gmra.mxu3 %v157_v27 }
  0xbb   :  { %468 = vmatpush.msrb.mxu3 %v885_v0 }
  0xbd   :  { %469 = vmatpush.msrb.mxu3 %v887_v1  ;;  %v400_v52 = vpop.f32.mrf.mxu1 }
  0xbe   :  { %v401_v53 = vadd.f32 %v699_v51, %v400_v52 }
 0x13d   :  { %v223_v33 = vpop.f32.mrf.mxu3 }
 0x13e   :  { %v226_v34 = vadd.f32 %v223_v33, %v188_v32 }
 0x140   :  { %v227_v35 = vmax.f32 %v226_v34, 0.0 }
 0x142   :  { %229 = vst [vmem:[#allocation11 + $0x4] sm:$0xf] %v227_v35  ;;  %293 = vmatmul.f32.vlgmr.msra.gmra.mxu2 %v227_v35 }
 0x143   :  { %610 = vmatpush.msra.mxu2 %v885_v0  ;;  %v701_v0 = vld [vmem:[%s1106_s3] ss:$0 sm:$0xff] }
 0x145   :  { %611 = vmatpush.msra.mxu2 %v887_v1 }
 0x14a   :  { %684 = vmatmul.msk.f32.vlgmr.msrb.gmra.mxu2 %vm96_vm0, %v515_v50 }
 0x14b   :  { %632 = vmatpush.msrb.mxu2 %v890_v2 }
 0x14d   :  { %633 = vmatpush.msrb.mxu2 %v896_v3 }
 0x14f   :  { %634 = vmatpush.msrb.mxu2 %v901_v5 }
 0x151   :  { %635 = vmatpush.msrb.mxu2 %v907_v7  ;;  %v702_v7 = vld [vmem:[%s1106_s3] ss:$0 sm:$0xff] }
 0x152   :  { %685 = vmatmul.msk.f32.vlgmr.msra.gmra.mxu2 %vm96_vm0, %v586_v57 }
 0x153   :  { %636 = vmatpush.msrb.mxu2 %v909_v8 }
 0x155   :  { %637 = vmatpush.msrb.mxu2 %v919_v9 }
 0x157   :  { %638 = vmatpush.msrb.mxu2 %v925_v10 }
 0x159   :  { %639 = vmatpush.msrb.mxu2 %v930_v11 }
 0x15b   :  { %640 = vmatpush.msrb.mxu2 %v935_v12 }
 0x15d   :  { %641 = vmatpush.msrb.mxu2 %v940_v13 }
 0x15f   :  { %642 = vmatpush.msrb.mxu2 %v945_v14 }
 0x161   :  { %643 = vmatpush.msrb.mxu2 %v950_v15 }
 0x163   :  { %644 = vmatpush.msrb.mxu2 %v955_v16 }
 0x165   :  { %645 = vmatpush.msrb.mxu2 %v960_v17 }
 0x167   :  { %646 = vmatpush.msrb.mxu2 %v965_v18 }
 0x169   :  { %647 = vmatpush.msrb.mxu2 %v970_v19 }
 0x1c5   :  { %v294_v39 = vpop.f32.mrf.mxu2 }
 0x1c6   :  { %v297_v40 = vadd.f32 %v294_v39, %v259_v38 }
 0x1c8   :  { %v298_v41 = vmax.f32 %v297_v40, 0.0 }
 0x1ca   :  { %300 = vst [vmem:[#allocation11 + $0x8] sm:$0xf] %v298_v41  ;;  %364 = vmatmul.f32.vlgmr.msra.gmra.mxu0 %v298_v41 }
 0x1cd   :  { %v542_v1 = vpop.f32.mrf.mxu2 }
 0x1ce   :  { %v543_v2 = vadd.f32 %v701_v0, %v542_v1 }
 0x1d5   :  { %v613_v6 = vpop.f32.mrf.mxu2 }
 0x1d6   :  { %v614_v8 = vadd.f32 %v702_v7, %v613_v6 }
 0x247   :  { %v365_v46 = vpop.f32.mrf.mxu0 }
 0x248   :  { %v368_v47 = vadd.f32 %v365_v46, %v330_v45 }
 0x24a   :  { %v369_v48 = vmax.f32 %v368_v47, 0.0 }
 0x24c   :  { %371 = vst [vmem:[#allocation11 + $0xc] sm:$0xf] %v369_v48  ;;  %435 = vmatmul.f32.vlgmr.msra.gmra.mxu3 %v369_v48 }
 0x254   :  { %683 = vmatmul.msk.f32.vlgmr.msrb.gmra.mxu3 %vm96_vm0, %v444_v49 }
 0x2cf   :  { %v436_v54 = vpop.f32.mrf.mxu3 }
 0x2d0   :  { %v439_v55 = vadd.f32 %v436_v54, %v401_v53 }
 0x2d2   :  { %v440_v56 = vmax.f32 %v439_v55, 0.0 }
 0x2d4   :  { %442 = vst [vmem:[#allocation11 + $0x10] sm:$0xf] %v440_v56  ;;  %506 = vmatmul.f32.vlgmr.msrb.gmra.mxu1 %v440_v56 }
 0x2d7   :  { %v471_v59 = vpop.f32.mrf.mxu3 }
 0x2d8   :  { %v472_v60 = vadd.f32 %v700_v58, %v471_v59 }
 0x351   :  { %v507_v61 = vpop.f32.mrf.mxu1 }
 0x352   :  { %v510_v62 = vadd.f32 %v507_v61, %v472_v60 }
 0x354   :  { %v511_v63 = vmax.f32 %v510_v62, 0.0 }
 0x356   :  { %513 = vst [vmem:[#allocation11 + $0x14] sm:$0xf] %v511_v63  ;;  %577 = vmatmul.f32.vlgmr.msrb.gmra.mxu0 %v511_v63 }
 0x3d3   :  { %v578_v3 = vpop.f32.mrf.mxu0 }
 0x3d4   :  { %v581_v4 = vadd.f32 %v578_v3, %v543_v2 }
 0x3d6   :  { %v582_v5 = vmax.f32 %v581_v4, 0.0 }
 0x3d8   :  { %584 = vst [vmem:[#allocation11 + $0x18] sm:$0xf] %v582_v5  ;;  %648 = vmatmul.f32.vlgmr.msrb.gmra.mxu2 %v582_v5 }
 0x45b   :  { %v649_v9 = vpop.f32.mrf.mxu2 }
 0x45c   :  { %v652_v10 = vadd.f32 %v649_v9, %v614_v8 }
 0x45e   :  { %v653_v11 = vmax.f32 %v652_v10, 0.0 }
 0x460   :  { %655 = vst [vmem:[#allocation11 + $0x1c] sm:$0xf] %v653_v11 }
 0x461   :  { %656 = vst [vmem:[#allocation2] sm:$0xf] %v653_v11  ;;  %669 = dma.vmem_to_hbm [thread:$0]  %s662_s1, 512, %s664_s9, [#allocation5], %s835_s30, %s835_s30, %s836_s6  }
 0x462   :  { %829 = dma.done.wait [#allocation5], 512  }
 0x463   :  { %830 = vsyncadd [#allocation5], 4294966784 }
 0x464   :  { %674 = vsyncpa [#allocation4], 1 }
 0x465   :  { %675 = vsyncpa [#allocation7], 1 }
 0x466   :  { %676 = vsyncpa [#allocation10], 1 }
 0x467   :  { %677 = vsyncpa [#allocation5], 1 }

// kernel: tpu_custom_call.1
= control target key start
LH: loop header
LB: loop body
LE: loop exit
PB: predicated region body
PF: predicated region fallthrough
CT: control target
= control target key end

     0   :  { %10 = vsyncpa [#allocation4], 0  ;;  %s1103_s0 = inlined_call_operand.hbm [shape: f32[8,4,16], index: 0, kind: input, shape index: {}]   ;;  %s1104_s1 = inlined_call_operand.hbm [shape: f32[16,128], index: 1, kind: input, shape index: {}]   ;;  %s1105_s2 = inlined_call_operand.hbm [shape: f32[128,128], index: 2, kind: input, shape index: {}]   ;;  %s1106_s3 = inlined_call_operand.vmem [shape: f32[1,128], index: 3, kind: input, shape index: {}]   ;;  %s1107_s4 = inlined_call_operand.hbm [shape: f32[4,128], index: 4, kind: input, shape index: {}]   ;;  %s1108_s5 = inlined_call_operand.hbm [shape: f32[8,4,128], index: 5, kind: output, shape index: {}]  }
   0x1   :  { %11 = vsyncpa [#allocation7], 0 }
   0x2   :  { %12 = vsyncpa [#allocation10], 0  ;;  %s31_s20 = sshll.u32 %s1104_s1, 4  ;;  %s32_s20 = int_to_ptr.hbm [resolvable:$true] %s31_s20 }
   0x3   :  { %13 = vsyncpa [#allocation5], 0  ;;  %s831_s21 = smov [#allocation6]   ;;  %s18_s25 = sshll.u32 %s1103_s0, 4  ;;  %s19_s25 = int_to_ptr.hbm [resolvable:$true] %s18_s25 }
   0x4   :  { %s33_s22 = sshll.u32 %s831_s21, 4  ;;  %s832_s26 = smov 128   ;;  %s34_s22 = int_to_ptr.vmem [resolvable:$true] %s33_s22 }
   0x5   :  { %s833_s27 = smov 8   ;;  %s834_s28 = smov [#allocation3]  }
   0x6   :  { %39 = dma.hbm_to_vmem [thread:$0]  %s32_s20, 256, %s34_s22, [#allocation7], %s832_s26, %s832_s26, %s833_s27  }
   0x7   :  { %s20_s29 = sshll.u32 %s834_s28, 4  ;;  %s835_s30 = smov 64   ;;  %s21_s29 = int_to_ptr.vmem [resolvable:$true] %s20_s29 }
   0x8   :  { %s836_s6 = smov 4   ;;  %s44_s8 = sshll.u32 %s1105_s2, 4  ;;  %s45_s8 = int_to_ptr.hbm [resolvable:$true] %s44_s8 }
   0x9   :  { %26 = dma.hbm_to_vmem [thread:$0]  %s19_s25, 512, %s21_s29, [#allocation4], %s835_s30, %s835_s30, %s836_s6  }
   0xa   :  { %s837_s9 = smov [#allocation8]   ;;  %s60_s12 = sshll.u32 %s1107_s4, 4  ;;  %s61_s12 = int_to_ptr.hbm [resolvable:$true] %s60_s12 }
   0xb   :  { %s46_s0 = sshll.u32 %s837_s9, 4  ;;  %s838_s13 = smov [#allocation9]   ;;  %s47_s0 = int_to_ptr.vmem [resolvable:$true] %s46_s0 }
   0xc   :  { %52 = dma.hbm_to_vmem [thread:$0]  %s45_s8, 2048, %s47_s0, [#allocation7], %s832_s26, %s832_s26, %s833_s27  }
   0xd   :  { %s62_s14 = sshll.u32 %s838_s13, 4  ;;  %s63_s14 = int_to_ptr.vmem [resolvable:$true] %s62_s14 }
   0xe   :  { %65 = dma.hbm_to_vmem [thread:$0]  %s61_s12, 64, %s63_s14, [#allocation10]  }
   0xf   :  { %823 = dma.done.wait [#allocation4], 512  }
  0x10   :  { %824 = vsyncadd [#allocation4], 4294966784 }
  0x11   :  { %825 = dma.done.wait [#allocation7], 2304  }
  0x12   :  { %826 = vsyncadd [#allocation7], 4294964992 }
  0x13   :  { %827 = dma.done.wait [#allocation10], 64  }
  0x14   :  { %828 = vsyncadd [#allocation10], 4294967232  ;;  %v885_v0 = vld [vmem:[#allocation6 + $0x8] sm:$0xff]  ;;  %v887_v1 = vld [vmem:[#allocation6] sm:$0xff]  ;;  %vm96_vm0 = vcmask 130048   ;;  %s839_s29 = smov [#allocation11]  }
  0x15   :  { %114 = vmatpush.msra.mxu1 %v885_v0  ;;  %v890_v2 = vld [vmem:[#allocation8 + $0x78] sm:$0xff]  ;;  %184 = vmatpush.msra.mxu3 %v885_v0  ;;  %v896_v3 = vld [vmem:[#allocation8 + $0x70] sm:$0xff]  ;;  %v901_v5 = vld [vmem:[#allocation8 + $0x68] sm:$0xff]  ;;  %s661_s1 = sshll.u32 %s839_s29, 4  ;;  %s663_s9 = sshll.u32 %s1108_s5, 4  ;;  %s662_s1 = int_to_ptr.vmem [resolvable:$true] %s661_s1  ;;  %s664_s9 = int_to_ptr.hbm [resolvable:$true] %s663_s9 }
  0x16   :  { %277 = vmatpush.msra.mxu2 %v890_v2  ;;  %255 = vmatpush.msra.mxu0 %v885_v0  ;;  %v89_v4 = vld [vmem:[#allocation3] sm:$0xf]  ;;  %v86_v6 = vld [vmem:[#allocation9] sm:$0xf]  ;;  %v909_v8 = vld [vmem:[#allocation8 + $0x58] sm:$0xff] }
  0x17   :  { %115 = vmatpush.msra.mxu1 %v887_v1  ;;  %185 = vmatpush.msra.mxu3 %v887_v1  ;;  %v907_v7 = vld [vmem:[#allocation8 + $0x60] sm:$0xff]  ;;  %87 = vst [vmem:[#allocation2] sm:$0xf] %v86_v6  ;;  %v919_v9 = vld [vmem:[#allocation8 + $0x50] sm:$0xff]  ;;  %v925_v10 = vld [vmem:[#allocation8 + $0x48] sm:$0xff] }
  0x18   :  { %678 = vmatmul.msk.f32.vlgmr.msra.gmra.mxu1 %vm96_vm0, %v89_v4  ;;  %278 = vmatpush.msra.mxu2 %v896_v3  ;;  %v930_v11 = vld [vmem:[#allocation8 + $0x40] sm:$0xff]  ;;  %v935_v12 = vld [vmem:[#allocation8 + $0x38] sm:$0xff]  ;;  %v940_v13 = vld [vmem:[#allocation8 + $0x30] sm:$0xff] }
  0x19   :  { %136 = vmatpush.msrb.mxu1 %v890_v2  ;;  %206 = vmatpush.msrb.mxu3 %v890_v2  ;;  %v945_v14 = vld [vmem:[#allocation8 + $0x28] sm:$0xff]  ;;  %v950_v15 = vld [vmem:[#allocation8 + $0x20] sm:$0xff]  ;;  %v955_v16 = vld [vmem:[#allocation8 + $0x18] sm:$0xff] }
  0x1a   :  { %279 = vmatpush.msra.mxu2 %v901_v5  ;;  %256 = vmatpush.msra.mxu0 %v887_v1  ;;  %v960_v17 = vld [vmem:[#allocation8 + $0x10] sm:$0xff]  ;;  %v965_v18 = vld [vmem:[#allocation8 + $0x8] sm:$0xff]  ;;  %v970_v19 = vld [vmem:[#allocation8] sm:$0xff] }
  0x1b   :  { %137 = vmatpush.msrb.mxu1 %v896_v3  ;;  %207 = vmatpush.msrb.mxu3 %v896_v3  ;;  %v160_v21 = vld [vmem:[#allocation3 + $0x4] sm:$0xf]  ;;  %v695_v23 = vld [vmem:[%s1106_s3] ss:$0 sm:$0xff]  ;;  %v231_v28 = vld [vmem:[#allocation3 + $0x8] sm:$0xf] }
  0x1c   :  { %280 = vmatpush.msra.mxu2 %v907_v7  ;;  %326 = vmatpush.msrb.mxu0 %v885_v0  ;;  %v302_v29 = vld [vmem:[#allocation3 + $0xc] sm:$0xf]  ;;  %v696_v31 = vld [vmem:[%s1106_s3] ss:$0 sm:$0xff]  ;;  %v373_v42 = vld [vmem:[#allocation3 + $0x10] sm:$0xf] }
  0x1d   :  { %138 = vmatpush.msrb.mxu1 %v901_v5  ;;  %208 = vmatpush.msrb.mxu3 %v901_v5  ;;  %v697_v36 = vld [vmem:[%s1106_s3] ss:$0 sm:$0xff]  ;;  %v444_v49 = vld [vmem:[#allocation3 + $0x14] sm:$0xf]  ;;  %v515_v50 = vld [vmem:[#allocation3 + $0x18] sm:$0xf] }
  0x1e   :  { %281 = vmatpush.msra.mxu2 %v909_v8  ;;  %327 = vmatpush.msrb.mxu0 %v887_v1  ;;  %v88_v20 = vld [vmem:[#allocation2] sm:$0xf] }
  0x1f   :  { %139 = vmatpush.msrb.mxu1 %v907_v7  ;;  %209 = vmatpush.msrb.mxu3 %v907_v7  ;;  %v698_v44 = vld [vmem:[%s1106_s3] ss:$0 sm:$0xff] }
  0x20   :  { %282 = vmatpush.msra.mxu2 %v919_v9  ;;  %679 = vmatmul.msk.f32.vlgmr.msra.gmra.mxu3 %vm96_vm0, %v160_v21  ;;  %v699_v51 = vld [vmem:[%s1106_s3] ss:$0 sm:$0xff] }
  0x21   :  { %140 = vmatpush.msrb.mxu1 %v909_v8  ;;  %210 = vmatpush.msrb.mxu3 %v909_v8  ;;  %v586_v57 = vld [vmem:[#allocation3 + $0x1c] sm:$0xf] }
  0x22   :  { %283 = vmatpush.msra.mxu2 %v925_v10  ;;  %680 = vmatmul.msk.f32.vlgmr.msra.gmra.mxu0 %vm96_vm0, %v231_v28  ;;  %v700_v58 = vld [vmem:[%s1106_s3] ss:$0 sm:$0xff] }
  0x23   :  { %141 = vmatpush.msrb.mxu1 %v919_v9  ;;  %211 = vmatpush.msrb.mxu3 %v919_v9 }
  0x24   :  { %284 = vmatpush.msra.mxu2 %v930_v11  ;;  %348 = vmatpush.msra.mxu0 %v890_v2 }
  0x25   :  { %142 = vmatpush.msrb.mxu1 %v925_v10  ;;  %212 = vmatpush.msrb.mxu3 %v925_v10 }
  0x26   :  { %285 = vmatpush.msra.mxu2 %v935_v12  ;;  %349 = vmatpush.msra.mxu0 %v896_v3 }
  0x27   :  { %143 = vmatpush.msrb.mxu1 %v930_v11  ;;  %213 = vmatpush.msrb.mxu3 %v930_v11 }
  0x28   :  { %286 = vmatpush.msra.mxu2 %v940_v13  ;;  %350 = vmatpush.msra.mxu0 %v901_v5 }
  0x29   :  { %144 = vmatpush.msrb.mxu1 %v935_v12  ;;  %214 = vmatpush.msrb.mxu3 %v935_v12 }
  0x2a   :  { %287 = vmatpush.msra.mxu2 %v945_v14  ;;  %351 = vmatpush.msra.mxu0 %v907_v7 }
  0x2b   :  { %145 = vmatpush.msrb.mxu1 %v940_v13  ;;  %215 = vmatpush.msrb.mxu3 %v940_v13 }
  0x2c   :  { %288 = vmatpush.msra.mxu2 %v950_v15  ;;  %681 = vmatmul.msk.f32.vlgmr.msrb.gmra.mxu0 %vm96_vm0, %v302_v29 }
  0x2d   :  { %146 = vmatpush.msrb.mxu1 %v945_v14  ;;  %216 = vmatpush.msrb.mxu3 %v945_v14 }
  0x2e   :  { %289 = vmatpush.msra.mxu2 %v955_v16  ;;  %352 = vmatpush.msra.mxu0 %v909_v8 }
  0x2f   :  { %147 = vmatpush.msrb.mxu1 %v950_v15  ;;  %217 = vmatpush.msrb.mxu3 %v950_v15 }
  0x30   :  { %290 = vmatpush.msra.mxu2 %v960_v17  ;;  %353 = vmatpush.msra.mxu0 %v919_v9 }
  0x31   :  { %148 = vmatpush.msrb.mxu1 %v955_v16  ;;  %218 = vmatpush.msrb.mxu3 %v955_v16 }
  0x32   :  { %291 = vmatpush.msra.mxu2 %v965_v18  ;;  %354 = vmatpush.msra.mxu0 %v925_v10 }
  0x33   :  { %149 = vmatpush.msrb.mxu1 %v960_v17  ;;  %219 = vmatpush.msrb.mxu3 %v960_v17 }
  0x34   :  { %292 = vmatpush.msra.mxu2 %v970_v19  ;;  %355 = vmatpush.msra.mxu0 %v930_v11 }
  0x35   :  { %150 = vmatpush.msrb.mxu1 %v965_v18  ;;  %220 = vmatpush.msrb.mxu3 %v965_v18 }
  0x36   :  { %539 = vmatpush.msrb.mxu2 %v885_v0  ;;  %356 = vmatpush.msra.mxu0 %v935_v12 }
  0x37   :  { %151 = vmatpush.msrb.mxu1 %v970_v19  ;;  %221 = vmatpush.msrb.mxu3 %v970_v19 }
  0x38   :  { %152 = vmatmul.f32.vlgmr.msrb.gmra.mxu1 %v88_v20  ;;  %540 = vmatpush.msrb.mxu2 %v887_v1 }
  0x39   :  { %397 = vmatpush.msra.mxu1 %v885_v0  ;;  %419 = vmatpush.msra.mxu3 %v890_v2 }
  0x3a   :  { %357 = vmatpush.msra.mxu0 %v940_v13 }
  0x3b   :  { %398 = vmatpush.msra.mxu1 %v887_v1  ;;  %420 = vmatpush.msra.mxu3 %v896_v3 }
  0x3c   :  { %358 = vmatpush.msra.mxu0 %v945_v14 }
  0x3d   :  { %490 = vmatpush.msrb.mxu1 %v890_v2  ;;  %421 = vmatpush.msra.mxu3 %v901_v5 }
  0x3e   :  { %359 = vmatpush.msra.mxu0 %v950_v15 }
  0x3f   :  { %491 = vmatpush.msrb.mxu1 %v896_v3  ;;  %422 = vmatpush.msra.mxu3 %v907_v7 }
  0x40   :  { %360 = vmatpush.msra.mxu0 %v955_v16  ;;  %682 = vmatmul.msk.f32.vlgmr.msra.gmra.mxu1 %vm96_vm0, %v373_v42 }
  0x41   :  { %492 = vmatpush.msrb.mxu1 %v901_v5  ;;  %423 = vmatpush.msra.mxu3 %v909_v8 }
  0x42   :  { %361 = vmatpush.msra.mxu0 %v960_v17 }
  0x43   :  { %493 = vmatpush.msrb.mxu1 %v907_v7  ;;  %424 = vmatpush.msra.mxu3 %v919_v9 }
  0x44   :  { %362 = vmatpush.msra.mxu0 %v965_v18 }
  0x45   :  { %494 = vmatpush.msrb.mxu1 %v909_v8  ;;  %425 = vmatpush.msra.mxu3 %v925_v10 }
  0x46   :  { %363 = vmatpush.msra.mxu0 %v970_v19 }
  0x47   :  { %495 = vmatpush.msrb.mxu1 %v919_v9  ;;  %426 = vmatpush.msra.mxu3 %v930_v11 }
  0x48   :  { %561 = vmatpush.msrb.mxu0 %v890_v2 }
  0x49   :  { %496 = vmatpush.msrb.mxu1 %v925_v10  ;;  %427 = vmatpush.msra.mxu3 %v935_v12 }
  0x4a   :  { %562 = vmatpush.msrb.mxu0 %v896_v3 }
  0x4b   :  { %497 = vmatpush.msrb.mxu1 %v930_v11  ;;  %428 = vmatpush.msra.mxu3 %v940_v13 }
  0x4c   :  { %563 = vmatpush.msrb.mxu0 %v901_v5 }
  0x4d   :  { %498 = vmatpush.msrb.mxu1 %v935_v12  ;;  %429 = vmatpush.msra.mxu3 %v945_v14 }
  0x4e   :  { %564 = vmatpush.msrb.mxu0 %v907_v7 }
  0x4f   :  { %499 = vmatpush.msrb.mxu1 %v940_v13  ;;  %430 = vmatpush.msra.mxu3 %v950_v15 }
  0x50   :  { %565 = vmatpush.msrb.mxu0 %v909_v8 }
  0x51   :  { %500 = vmatpush.msrb.mxu1 %v945_v14  ;;  %431 = vmatpush.msra.mxu3 %v955_v16 }
  0x52   :  { %566 = vmatpush.msrb.mxu0 %v919_v9 }
  0x53   :  { %501 = vmatpush.msrb.mxu1 %v950_v15  ;;  %432 = vmatpush.msra.mxu3 %v960_v17 }
  0x54   :  { %567 = vmatpush.msrb.mxu0 %v925_v10 }
  0x55   :  { %502 = vmatpush.msrb.mxu1 %v955_v16  ;;  %433 = vmatpush.msra.mxu3 %v965_v18 }
  0x56   :  { %568 = vmatpush.msrb.mxu0 %v930_v11 }
  0x57   :  { %503 = vmatpush.msrb.mxu1 %v960_v17  ;;  %434 = vmatpush.msra.mxu3 %v970_v19 }
  0x58   :  { %569 = vmatpush.msrb.mxu0 %v935_v12 }
  0x59   :  { %504 = vmatpush.msrb.mxu1 %v965_v18 }
  0x5a   :  { %570 = vmatpush.msrb.mxu0 %v940_v13 }
  0x5b   :  { %505 = vmatpush.msrb.mxu1 %v970_v19 }
  0x5c   :  { %571 = vmatpush.msrb.mxu0 %v945_v14 }
  0x5e   :  { %572 = vmatpush.msrb.mxu0 %v950_v15 }
  0x60   :  { %573 = vmatpush.msrb.mxu0 %v955_v16 }
  0x62   :  { %574 = vmatpush.msrb.mxu0 %v960_v17 }
  0x64   :  { %575 = vmatpush.msrb.mxu0 %v965_v18 }
  0x66   :  { %576 = vmatpush.msrb.mxu0 %v970_v19 }
  0x95   :  { %v117_v22 = vpop.f32.mrf.mxu1 }
  0x96   :  { %v118_v24 = vadd.f32 %v695_v23, %v117_v22 }
  0x9f   :  { %v258_v37 = vpop.f32.mrf.mxu0 }
  0xa0   :  { %v259_v38 = vadd.f32 %v697_v36, %v258_v37 }
  0xa3   :  { %v187_v30 = vpop.f32.mrf.mxu3 }
  0xa4   :  { %v188_v32 = vadd.f32 %v696_v31, %v187_v30 }
  0xa9   :  { %v329_v43 = vpop.f32.mrf.mxu0 }
  0xaa   :  { %v330_v45 = vadd.f32 %v698_v44, %v329_v43 }
  0xb5   :  { %v153_v25 = vpop.f32.mrf.mxu1 }
  0xb6   :  { %v156_v26 = vadd.f32 %v153_v25, %v118_v24 }
  0xb8   :  { %v157_v27 = vmax.f32 %v156_v26, 0.0 }
  0xba   :  { %158 = vst [vmem:[#allocation11] sm:$0xf] %v157_v27  ;;  %222 = vmatmul.f32.vlgmr.msrb.gmra.mxu3 %v157_v27 }
  0xbb   :  { %468 = vmatpush.msrb.mxu3 %v885_v0 }
  0xbd   :  { %469 = vmatpush.msrb.mxu3 %v887_v1  ;;  %v400_v52 = vpop.f32.mrf.mxu1 }
  0xbe   :  { %v401_v53 = vadd.f32 %v699_v51, %v400_v52 }
 0x13d   :  { %v223_v33 = vpop.f32.mrf.mxu3 }
 0x13e   :  { %v226_v34 = vadd.f32 %v223_v33, %v188_v32 }
 0x140   :  { %v227_v35 = vmax.f32 %v226_v34, 0.0 }
 0x142   :  { %229 = vst [vmem:[#allocation11 + $0x4] sm:$0xf] %v227_v35  ;;  %293 = vmatmul.f32.vlgmr.msra.gmra.mxu2 %v227_v35 }
 0x143   :  { %610 = vmatpush.msra.mxu2 %v885_v0  ;;  %v701_v0 = vld [vmem:[%s1106_s3] ss:$0 sm:$0xff] }
 0x145   :  { %611 = vmatpush.msra.mxu2 %v887_v1 }
 0x14a   :  { %684 = vmatmul.msk.f32.vlgmr.msrb.gmra.mxu2 %vm96_vm0, %v515_v50 }
 0x14b   :  { %632 = vmatpush.msrb.mxu2 %v890_v2 }
 0x14d   :  { %633 = vmatpush.msrb.mxu2 %v896_v3 }
 0x14f   :  { %634 = vmatpush.msrb.mxu2 %v901_v5 }
 0x151   :  { %635 = vmatpush.msrb.mxu2 %v907_v7  ;;  %v702_v7 = vld [vmem:[%s1106_s3] ss:$0 sm:$0xff] }
 0x152   :  { %685 = vmatmul.msk.f32.vlgmr.msra.gmra.mxu2 %vm96_vm0, %v586_v57 }
 0x153   :  { %636 = vmatpush.msrb.mxu2 %v909_v8 }
 0x155   :  { %637 = vmatpush.msrb.mxu2 %v919_v9 }
 0x157   :  { %638 = vmatpush.msrb.mxu2 %v925_v10 }
 0x159   :  { %639 = vmatpush.msrb.mxu2 %v930_v11 }
 0x15b   :  { %640 = vmatpush.msrb.mxu2 %v935_v12 }
 0x15d   :  { %641 = vmatpush.msrb.mxu2 %v940_v13 }
 0x15f   :  { %642 = vmatpush.msrb.mxu2 %v945_v14 }
 0x161   :  { %643 = vmatpush.msrb.mxu2 %v950_v15 }
 0x163   :  { %644 = vmatpush.msrb.mxu2 %v955_v16 }
 0x165   :  { %645 = vmatpush.msrb.mxu2 %v960_v17 }
 0x167   :  { %646 = vmatpush.msrb.mxu2 %v965_v18 }
 0x169   :  { %647 = vmatpush.msrb.mxu2 %v970_v19 }
 0x1c5   :  { %v294_v39 = vpop.f32.mrf.mxu2 }
 0x1c6   :  { %v297_v40 = vadd.f32 %v294_v39, %v259_v38 }
 0x1c8   :  { %v298_v41 = vmax.f32 %v297_v40, 0.0 }
 0x1ca   :  { %300 = vst [vmem:[#allocation11 + $0x8] sm:$0xf] %v298_v41  ;;  %364 = vmatmul.f32.vlgmr.msra.gmra.mxu0 %v298_v41 }
 0x1cd   :  { %v542_v1 = vpop.f32.mrf.mxu2 }
 0x1ce   :  { %v543_v2 = vadd.f32 %v701_v0, %v542_v1 }
 0x1d5   :  { %v613_v6 = vpop.f32.mrf.mxu2 }
 0x1d6   :  { %v614_v8 = vadd.f32 %v702_v7, %v613_v6 }
 0x247   :  { %v365_v46 = vpop.f32.mrf.mxu0 }
 0x248   :  { %v368_v47 = vadd.f32 %v365_v46, %v330_v45 }
 0x24a   :  { %v369_v48 = vmax.f32 %v368_v47, 0.0 }
 0x24c   :  { %371 = vst [vmem:[#allocation11 + $0xc] sm:$0xf] %v369_v48  ;;  %435 = vmatmul.f32.vlgmr.msra.gmra.mxu3 %v369_v48 }
 0x254   :  { %683 = vmatmul.msk.f32.vlgmr.msrb.gmra.mxu3 %vm96_vm0, %v444_v49 }
 0x2cf   :  { %v436_v54 = vpop.f32.mrf.mxu3 }
 0x2d0   :  { %v439_v55 = vadd.f32 %v436_v54, %v401_v53 }
 0x2d2   :  { %v440_v56 = vmax.f32 %v439_v55, 0.0 }
 0x2d4   :  { %442 = vst [vmem:[#allocation11 + $0x10] sm:$0xf] %v440_v56  ;;  %506 = vmatmul.f32.vlgmr.msrb.gmra.mxu1 %v440_v56 }
 0x2d7   :  { %v471_v59 = vpop.f32.mrf.mxu3 }
 0x2d8   :  { %v472_v60 = vadd.f32 %v700_v58, %v471_v59 }
 0x351   :  { %v507_v61 = vpop.f32.mrf.mxu1 }
 0x352   :  { %v510_v62 = vadd.f32 %v507_v61, %v472_v60 }
 0x354   :  { %v511_v63 = vmax.f32 %v510_v62, 0.0 }
 0x356   :  { %513 = vst [vmem:[#allocation11 + $0x14] sm:$0xf] %v511_v63  ;;  %577 = vmatmul.f32.vlgmr.msrb.gmra.mxu0 %v511_v63 }
 0x3d3   :  { %v578_v3 = vpop.f32.mrf.mxu0 }
 0x3d4   :  { %v581_v4 = vadd.f32 %v578_v3, %v543_v2 }
 0x3d6   :  { %v582_v5 = vmax.f32 %v581_v4, 0.0 }
 0x3d8   :  { %584 = vst [vmem:[#allocation11 + $0x18] sm:$0xf] %v582_v5  ;;  %648 = vmatmul.f32.vlgmr.msrb.gmra.mxu2 %v582_v5 }
 0x45b   :  { %v649_v9 = vpop.f32.mrf.mxu2 }
 0x45c   :  { %v652_v10 = vadd.f32 %v649_v9, %v614_v8 }
 0x45e   :  { %v653_v11 = vmax.f32 %v652_v10, 0.0 }
 0x460   :  { %655 = vst [vmem:[#allocation11 + $0x1c] sm:$0xf] %v653_v11 }
 0x461   :  { %656 = vst [vmem:[#allocation2] sm:$0xf] %v653_v11  ;;  %669 = dma.vmem_to_hbm [thread:$0]  %s662_s1, 512, %s664_s9, [#allocation5], %s835_s30, %s835_s30, %s836_s6  }
 0x462   :  { %829 = dma.done.wait [#allocation5], 512  }
 0x463   :  { %830 = vsyncadd [#allocation5], 4294966784 }
 0x464   :  { %674 = vsyncpa [#allocation4], 1 }
 0x465   :  { %675 = vsyncpa [#allocation7], 1 }
 0x466   :  { %676 = vsyncpa [#allocation10], 1 }
 0x467   :  { %677 = vsyncpa [#allocation5], 1 }

</bundles_post_ra>
